<compile_context>
chip_gen: v6e
topology: v6e:2x2x1
jax: 0.10.0
libtpu: 0.0.40
codegen_flags: <defaults>
</compile_context>

<pallas_src>
import jax
import jax.numpy as jnp
from jax.experimental import pallas as pl
from jax.experimental.pallas import tpu as pltpu


def _round_up(a, b):
    return ((a + b - 1) // b) * b


# ----------------------------------------------------------------------------
# Fused kernel: encoder (VPU FMAs) + superpixel pooling (MXU) + label votes
# ----------------------------------------------------------------------------
def _fused_kernel(x_ref, w_ref, b_ref, seg_ref, msk_ref,
                  img_ref, feat_ref, cnt_ref):
    # x_ref   (1, Cin, THW) f32    w_ref (C, Cin) f32    b_ref (C, 1) f32
    # seg_ref (1, 1, THW) int32    msk_ref (1, 1, THW) int32
    # img_ref (1, C, THW) f32   -- streamed out per HW tile
    # feat_ref(1, C, S)   f32   -- accumulator-resident over the HW axis
    # cnt_ref (1, L+1, S) f32   -- rows 0..L-1 = label votes, row L = pixel cnt
    t = pl.program_id(1)
    cin = x_ref.shape[1]
    thw = x_ref.shape[2]
    s = feat_ref.shape[2]
    lp1 = cnt_ref.shape[1]

    @pl.when(t == 0)
    def _init():
        feat_ref[...] = jnp.zeros_like(feat_ref)
        cnt_ref[...] = jnp.zeros_like(cnt_ref)

    # ---- encoder stand-in: pointwise conv unrolled over Cin (VPU) + ReLU ----
    f = w_ref[:, 0:1] * x_ref[0, 0:1, :]                       # (C, THW)
    for c in range(1, cin):                                    # Cin is tiny/static
        f = f + w_ref[:, c:c + 1] * x_ref[0, c:c + 1, :]
    f = jnp.maximum(f + b_ref[...], 0.0)                       # (C, THW) f32
    img_ref[0] = f

    # ---- one-hot segment membership built in-kernel from int32 ids ----
    seg = seg_ref[0]                                           # (1, THW) int32
    sid = jax.lax.broadcasted_iota(jnp.int32, (s, thw), 0)
    a_f = (jnp.broadcast_to(seg, (s, thw)) == sid).astype(jnp.float32)

    # ---- superpixel feature sums: bf16 MXU matmul, f32 accumulation ----
    feat_ref[0] += jnp.dot(f.astype(jnp.bfloat16),
                           a_f.T.astype(jnp.bfloat16),
                           preferred_element_type=jnp.float32)  # (C, S)

    # ---- label votes + pixel counts: VPU compare/mul + lane-reduce ----
    msk = msk_ref[0]                                           # (1, THW) int32
    for l in range(lp1 - 1):                                   # way is tiny/static
        m_l = (msk == l).astype(jnp.float32)                   # (1, THW)
        cnt_ref[0, l, :] += jnp.sum(a_f * m_l, axis=1)         # (S,)
    cnt_ref[0, lp1 - 1, :] += jnp.sum(a_f, axis=1)             # pixel counts

    # ---- finalize: segment means via EUP approx reciprocal ----
    @pl.when(t == pl.num_programs(1) - 1)
    def _finalize():
        pix = cnt_ref[0, lp1 - 1:lp1, :]                       # (1, S)
        inv = pl.reciprocal(jnp.maximum(pix, 1.0), approx=True)
        feat_ref[0] = feat_ref[0] * inv


def _feature_pallas(x, w_t, b, seg, msk, num_segments, way, tile_hw):
    n, cin, hw_pad = x.shape
    c = w_t.shape[0]
    s = num_segments
    t_steps = hw_pad // tile_hw
    return pl.pallas_call(
        _fused_kernel,
        out_shape=(
            jax.ShapeDtypeStruct((n, c, hw_pad), jnp.float32),   # feature map
            jax.ShapeDtypeStruct((n, c, s), jnp.float32),        # segment means
            jax.ShapeDtypeStruct((n, way + 1, s), jnp.float32),  # votes + pix
        ),
        grid_spec=pltpu.PrefetchScalarGridSpec(
            num_scalar_prefetch=0,
            grid=(n, t_steps),
            in_specs=[
                pl.BlockSpec((1, cin, tile_hw), lambda i, j: (i, 0, j)),
                pl.BlockSpec((c, cin), lambda i, j: (0, 0)),
                pl.BlockSpec((c, 1), lambda i, j: (0, 0)),
                pl.BlockSpec((1, 1, tile_hw), lambda i, j: (i, 0, j)),
                pl.BlockSpec((1, 1, tile_hw), lambda i, j: (i, 0, j)),
            ],
            out_specs=[
                pl.BlockSpec((1, c, tile_hw), lambda i, j: (i, 0, j)),
                pl.BlockSpec((1, c, s), lambda i, j: (i, 0, 0)),
                pl.BlockSpec((1, way + 1, s), lambda i, j: (i, 0, 0)),
            ],
        ),
        compiler_params=pltpu.CompilerParams(
            dimension_semantics=("parallel", "arbitrary")),
    )(x, w_t, b, seg, msk)


# ----------------------------------------------------------------------------
# Feature_extractor forward (JAX glue around the fused Pallas kernel)
# ----------------------------------------------------------------------------
class FeatureExtractorPallas:
    def __init__(self, in_channels=3, out_channels=128, way=2, shot=1, seed=0):
        self.way = way
        self.shot = shot
        self.out_channels = out_channels
        kw, kb = jax.random.split(jax.random.PRNGKey(seed))
        # deterministic stand-in params for encoder_fuse14 (1x1 conv + ReLU)
        self.w_t = jax.random.normal(kw, (out_channels, in_channels),
                                     jnp.float32) * 0.1
        self.b = jax.random.normal(kb, (out_channels, 1), jnp.float32) * 0.01

    def forward(self, supp_imgs, supp_mask, qry_imgs, qry_mask, img_segments,
                num_segments, tile_hw=2048):
        imgs = jnp.concatenate([supp_imgs, qry_imgs], axis=0)    # (N,Cin,H,W)
        masks = jnp.concatenate([supp_mask, qry_mask], axis=0)   # (N,H,W)
        n, cin, h, w = imgs.shape
        hw = h * w
        c = self.out_channels
        s = num_segments
        s_pad = _round_up(s, 8)

        # channel-major, lane-dense layouts (HW on the 128-lane axis)
        x = imgs.reshape(n, cin, hw).astype(jnp.float32)
        seg = img_segments.reshape(n, 1, hw).astype(jnp.int32)
        msk = masks.reshape(n, 1, hw).astype(jnp.int32)

        # HW tile (multiple of 128); pad tail with ids that match nothing
        t_hw = _round_up(min(tile_hw, _round_up(hw, 128)), 128)
        hw_pad = _round_up(hw, t_hw)
        if hw_pad != hw:
            pad = hw_pad - hw
            x = jnp.pad(x, ((0, 0), (0, 0), (0, pad)))
            seg = jnp.pad(seg, ((0, 0), (0, 0), (0, pad)), constant_values=-1)
            msk = jnp.pad(msk, ((0, 0), (0, 0), (0, pad)), constant_values=-1)

        img_flat, feat_cs, cnt = _feature_pallas(
            x, self.w_t, self.b, seg, msk, s_pad, self.way, t_hw)

        img_fts = img_flat[:, :, :hw].reshape(n, c, h, w)          # NCHW
        feat_cs = feat_cs[:, :, :s]                                # (N, C, S)
        cnt = cnt[:, :, :s]                                        # (N, way+1, S)

        feature_superpixel = jnp.transpose(feat_cs, (0, 2, 1)).reshape(n * s, c)
        # TODO(synk): jnp.argmax tie-breaking (smallest label) differs from
        # torch's max(list, key=count) pixel-order tie-break, and empty
        # superpixels are kept (feature 0, label 0) instead of being skipped
        # as in the reference np.unique loop.
        labels = jnp.argmax(cnt[:, :self.way, :], axis=1).astype(jnp.int32)
        label_shot = labels[: self.shot].reshape(-1)
        label_query = labels[self.shot:].reshape(-1)
        return feature_superpixel, label_shot, label_query, img_fts


# ----------------------------------------------------------------------------
# Pure-JAX reference (for numerical validation of the Pallas path)
# ----------------------------------------------------------------------------
def _reference_forward(imgs, masks, segs, w_t, b, num_segments, way):
    n, cin, h, w = imgs.shape
    hw = h * w
    c = w_t.shape[0]
    xf = imgs.reshape(n, cin, hw).astype(jnp.float32)
    f = (w_t[None, :, :, None] * xf[:, None, :, :]).sum(axis=2) + b[None]
    f = jnp.maximum(f, 0.0)                                        # (N,C,HW)
    seg = segs.reshape(n, hw)
    msk = masks.reshape(n, hw)
    onehot = (seg[:, None, :] ==
              jnp.arange(num_segments, dtype=seg.dtype)[None, :, None]
              ).astype(jnp.float32)                                # (N,S,HW)
    pix = onehot.sum(-1)                                           # (N,S)
    fsum = jnp.einsum('nsh,nch->nsc', onehot, f, precision='highest')
    fmean = fsum / jnp.maximum(pix, 1.0)[..., None]                # (N,S,C)
    votes = jnp.stack(
        [jnp.einsum('nsh,nh->ns', onehot, (msk == l).astype(jnp.float32),
                    precision='highest') for l in range(way)], axis=1)
    labels = jnp.argmax(votes, axis=1).astype(jnp.int32)           # (N,S)
    return fmean.reshape(n * num_segments, c), labels, f.reshape(n, c, h, w)


# ----------------------------------------------------------------------------
if __name__ == "__main__":
    way, shot, n_query = 2, 1, 1
    cin, h, w = 3, 32, 32
    cout = 128
    s = 16  # 4x4 grid of 8x8-pixel superpixels per image (all ids present)

    key = jax.random.PRNGKey(0)
    k1, k2, k3, k4 = jax.random.split(key, 4)
    supp_imgs = jax.random.normal(k1, (shot, cin, h, w), jnp.float32)
    qry_imgs = jax.random.normal(k2, (n_query, cin, h, w), jnp.float32)
    supp_mask = jax.random.randint(k3, (shot, h, w), 0, way, jnp.int32)
    qry_mask = jax.random.randint(k4, (n_query, h, w), 0, way, jnp.int32)

    # SLIC stand-in: regular 4x4 grid of superpixels, ids 0..15
    row_blk = jnp.arange(h) // (h // 4)
    col_blk = jnp.arange(w) // (w // 4)
    seg2d = (row_blk[:, None] * 4 + col_blk[None, :]).astype(jnp.int32)
    img_segments = jnp.broadcast_to(seg2d, (shot + n_query, h, w))

    model = FeatureExtractorPallas(in_channels=cin, out_channels=cout,
                                   way=way, shot=shot, seed=0)
    # tile_hw=512 -> HW=1024 splits into 2 reduction steps per image,
    # exercising the accumulate/finalize path on the "arbitrary" grid axis.
    feats, lbl_shot, lbl_query, img_fts = model.forward(
        supp_imgs, supp_mask, qry_imgs, qry_mask, img_segments,
        num_segments=s, tile_hw=512)
    jax.block_until_ready((feats, lbl_shot, lbl_query, img_fts))

    # shape checks
    assert feats.shape == ((shot + n_query) * s, cout)
    assert lbl_shot.shape == (shot * s,)
    assert lbl_query.shape == (n_query * s,)
    assert img_fts.shape == (shot + n_query, cout, h, w)

    # numerical checks against the pure-JAX reference
    ref_feat, ref_labels, ref_img = _reference_forward(
        jnp.concatenate([supp_imgs, qry_imgs], 0),
        jnp.concatenate([supp_mask, qry_mask], 0),
        img_segments, model.w_t, model.b, s, way)
    assert jnp.allclose(img_fts, ref_img, rtol=1e-3, atol=1e-4)
    assert jnp.allclose(feats, ref_feat, rtol=5e-2, atol=1e-2)
    labels_all = jnp.concatenate([lbl_shot, lbl_query]).reshape(shot + n_query, s)
    assert jnp.array_equal(labels_all, ref_labels)

    print("KERNEL_OK")
</pallas_src>

<mosaic_0001>
module attributes {stable_mosaic.version = 11 : i64} {
  func.func @_fused_kernel(%arg0: i32, %arg1: i32, %arg2: memref<1x3x512xf32, #tpu.memory_space<vmem>>, %arg3: memref<128x3xf32, #tpu.memory_space<vmem>>, %arg4: memref<128x1xf32, #tpu.memory_space<vmem>>, %arg5: memref<1x1x512xi32, #tpu.memory_space<vmem>>, %arg6: memref<1x1x512xi32, #tpu.memory_space<vmem>>, %arg7: memref<1x128x512xf32, #tpu.memory_space<vmem>>, %arg8: memref<1x128x16xf32, #tpu.memory_space<vmem>>, %arg9: memref<1x3x16xf32, #tpu.memory_space<vmem>>) attributes {dimension_semantics = [#tpu.dimension_semantics<parallel>, #tpu.dimension_semantics<arbitrary>], iteration_bounds = array<i64: 2, 2>, scalar_prefetch = 0 : i64, scratch_operands = 0 : i64, tpu.core_type = #tpu.core_type<tc>, window_params = [{transform_indices = @transform_0, window_bounds = array<i64: 1, 3, 512>}, {pipeline_mode = #tpu.pipeline_mode<synchronous>, transform_indices = @transform_1, window_bounds = array<i64: 128, 3>}, {pipeline_mode = #tpu.pipeline_mode<synchronous>, transform_indices = @transform_2, window_bounds = array<i64: 128, 1>}, {transform_indices = @transform_3, window_bounds = array<i64: 1, 1, 512>}, {transform_indices = @transform_4, window_bounds = array<i64: 1, 1, 512>}, {transform_indices = @transform_5, window_bounds = array<i64: 1, 128, 512>}, {transform_indices = @transform_6, window_bounds = array<i64: 1, 128, 16>}, {transform_indices = @transform_7, window_bounds = array<i64: 1, 3, 16>}]} {
    %c0_i32 = arith.constant 0 : i32
    %0 = arith.cmpi eq, %arg1, %c0_i32 : i32
    %1 = arith.extui %0 : i1 to i32
    %c0_i32_0 = arith.constant 0 : i32
    %2 = arith.cmpi ne, %1, %c0_i32_0 : i32
    scf.if %2 {
      %cst_55 = arith.constant 0.000000e+00 : f32
      %87 = vector.broadcast %cst_55 : f32 to vector<1x128x16xf32>
      %c0_56 = arith.constant 0 : index
      %c0_57 = arith.constant 0 : index
      %c0_58 = arith.constant 0 : index
      %88 = vector.load %arg8[%c0_56, %c0_57, %c0_58] : memref<1x128x16xf32, #tpu.memory_space<vmem>>, vector<1x128x16xf32>
      tpu.vector_store %arg8[%c0_56, %c0_57, %c0_58], %87 {strides = array<i32>} : memref<1x128x16xf32, #tpu.memory_space<vmem>>, vector<1x128x16xf32>,
      %cst_59 = arith.constant 0.000000e+00 : f32
      %89 = vector.broadcast %cst_59 : f32 to vector<1x3x16xf32>
      %c0_60 = arith.constant 0 : index
      %c0_61 = arith.constant 0 : index
      %c0_62 = arith.constant 0 : index
      %90 = vector.load %arg9[%c0_60, %c0_61, %c0_62] : memref<1x3x16xf32, #tpu.memory_space<vmem>>, vector<1x3x16xf32>
      tpu.vector_store %arg9[%c0_60, %c0_61, %c0_62], %89 {strides = array<i32>} : memref<1x3x16xf32, #tpu.memory_space<vmem>>, vector<1x3x16xf32>,
    } else {
    }
    %c0 = arith.constant 0 : index
    %c0_1 = arith.constant 0 : index
    %3 = vector.load %arg3[%c0, %c0_1] : memref<128x3xf32, #tpu.memory_space<vmem>>, vector<128x1xf32>
    %c0_2 = arith.constant 0 : index
    %c0_3 = arith.constant 0 : index
    %c0_4 = arith.constant 0 : index
    %4 = vector.load %arg2[%c0_2, %c0_3, %c0_4] : memref<1x3x512xf32, #tpu.memory_space<vmem>>, vector<1x1x512xf32>
    %5 = vector.shape_cast %4 : vector<1x1x512xf32> to vector<1x512xf32>
    %6 = vector.broadcast %3 : vector<128x1xf32> to vector<128x512xf32>
    %7 = vector.broadcast %5 : vector<1x512xf32> to vector<128x512xf32>
    %8 = arith.mulf %6, %7 : vector<128x512xf32>
    %c0_5 = arith.constant 0 : index
    %c1 = arith.constant 1 : index
    %9 = vector.load %arg3[%c0_5, %c1] : memref<128x3xf32, #tpu.memory_space<vmem>>, vector<128x1xf32>
    %c0_6 = arith.constant 0 : index
    %c1_7 = arith.constant 1 : index
    %c0_8 = arith.constant 0 : index
    %10 = vector.load %arg2[%c0_6, %c1_7, %c0_8] : memref<1x3x512xf32, #tpu.memory_space<vmem>>, vector<1x1x512xf32>
    %11 = vector.shape_cast %10 : vector<1x1x512xf32> to vector<1x512xf32>
    %12 = vector.broadcast %9 : vector<128x1xf32> to vector<128x512xf32>
    %13 = vector.broadcast %11 : vector<1x512xf32> to vector<128x512xf32>
    %14 = arith.mulf %12, %13 : vector<128x512xf32>
    %15 = arith.addf %8, %14 : vector<128x512xf32>
    %c0_9 = arith.constant 0 : index
    %c2 = arith.constant 2 : index
    %16 = vector.load %arg3[%c0_9, %c2] : memref<128x3xf32, #tpu.memory_space<vmem>>, vector<128x1xf32>
    %c0_10 = arith.constant 0 : index
    %c2_11 = arith.constant 2 : index
    %c0_12 = arith.constant 0 : index
    %17 = vector.load %arg2[%c0_10, %c2_11, %c0_12] : memref<1x3x512xf32, #tpu.memory_space<vmem>>, vector<1x1x512xf32>
    %18 = vector.shape_cast %17 : vector<1x1x512xf32> to vector<1x512xf32>
    %19 = vector.broadcast %16 : vector<128x1xf32> to vector<128x512xf32>
    %20 = vector.broadcast %18 : vector<1x512xf32> to vector<128x512xf32>
    %21 = arith.mulf %19, %20 : vector<128x512xf32>
    %22 = arith.addf %15, %21 : vector<128x512xf32>
    %c0_13 = arith.constant 0 : index
    %c0_14 = arith.constant 0 : index
    %23 = vector.load %arg4[%c0_13, %c0_14] : memref<128x1xf32, #tpu.memory_space<vmem>>, vector<128x1xf32>
    %24 = vector.broadcast %23 : vector<128x1xf32> to vector<128x512xf32>
    %25 = arith.addf %22, %24 : vector<128x512xf32>
    %cst = arith.constant 0.000000e+00 : f32
    %26 = vector.broadcast %cst : f32 to vector<128x512xf32>
    %27 = arith.maximumf %25, %26 : vector<128x512xf32>
    %c0_15 = arith.constant 0 : index
    %c0_16 = arith.constant 0 : index
    %c0_17 = arith.constant 0 : index
    %28 = vector.load %arg7[%c0_15, %c0_16, %c0_17] : memref<1x128x512xf32, #tpu.memory_space<vmem>>, vector<1x128x512xf32>
    %29 = vector.shape_cast %28 : vector<1x128x512xf32> to vector<128x512xf32>
    %30 = vector.shape_cast %27 : vector<128x512xf32> to vector<1x128x512xf32>
    tpu.vector_store %arg7[%c0_15, %c0_16, %c0_17], %30 {strides = array<i32>} : memref<1x128x512xf32, #tpu.memory_space<vmem>>, vector<1x128x512xf32>,
    %c0_18 = arith.constant 0 : index
    %c0_19 = arith.constant 0 : index
    %c0_20 = arith.constant 0 : index
    %31 = vector.load %arg5[%c0_18, %c0_19, %c0_20] : memref<1x1x512xi32, #tpu.memory_space<vmem>>, vector<1x1x512xi32>
    %32 = vector.shape_cast %31 : vector<1x1x512xi32> to vector<1x512xi32>
    %33 = tpu.iota {dimensions = array<i32: 0>} : vector<16x512xi32>
    %34 = vector.shape_cast %32 : vector<1x512xi32> to vector<1x512xi32>
    %35 = vector.broadcast %34 : vector<1x512xi32> to vector<16x512xi32>
    %36 = arith.cmpi eq, %35, %33 : vector<16x512xi32>
    %37 = arith.extui %36 : vector<16x512xi1> to vector<16x512xi32>
    %38 = arith.sitofp %37 : vector<16x512xi32> to vector<16x512xf32>
    %c0_21 = arith.constant 0 : index
    %c0_22 = arith.constant 0 : index
    %c0_23 = arith.constant 0 : index
    %39 = vector.load %arg8[%c0_21, %c0_22, %c0_23] : memref<1x128x16xf32, #tpu.memory_space<vmem>>, vector<1x128x16xf32>
    %40 = vector.shape_cast %39 : vector<1x128x16xf32> to vector<128x16xf32>
    %41 = arith.truncf %27 : vector<128x512xf32> to vector<128x512xbf16>
    %42 = tpu.transpose %38, [1, 0] : vector<16x512xf32> -> vector<512x16xf32>
    %43 = arith.truncf %42 : vector<512x16xf32> to vector<512x16xbf16>
    %cst_24 = arith.constant dense<0.000000e+00> : vector<128x16xf32>
    %44 = tpu.matmul %41, %43, %cst_24 {dimension_numbers = #tpu.dot_dimension_numbers<[1], [0], [0], [1], [0, 0, 1, 1], [], []>} : vector<128x512xbf16>, vector<512x16xbf16>, vector<128x16xf32> -> vector<128x16xf32>
    %45 = arith.addf %40, %44 : vector<128x16xf32>
    %c0_25 = arith.constant 0 : index
    %c0_26 = arith.constant 0 : index
    %c0_27 = arith.constant 0 : index
    %46 = vector.load %arg8[%c0_25, %c0_26, %c0_27] : memref<1x128x16xf32, #tpu.memory_space<vmem>>, vector<1x128x16xf32>
    %47 = vector.shape_cast %46 : vector<1x128x16xf32> to vector<128x16xf32>
    %48 = vector.shape_cast %45 : vector<128x16xf32> to vector<1x128x16xf32>
    tpu.vector_store %arg8[%c0_25, %c0_26, %c0_27], %48 {strides = array<i32>} : memref<1x128x16xf32, #tpu.memory_space<vmem>>, vector<1x128x16xf32>,
    %c0_28 = arith.constant 0 : index
    %c0_29 = arith.constant 0 : index
    %c0_30 = arith.constant 0 : index
    %49 = vector.load %arg6[%c0_28, %c0_29, %c0_30] : memref<1x1x512xi32, #tpu.memory_space<vmem>>, vector<1x1x512xi32>
    %50 = vector.shape_cast %49 : vector<1x1x512xi32> to vector<1x512xi32>
    %c0_i32_31 = arith.constant 0 : i32
    %51 = vector.broadcast %c0_i32_31 : i32 to vector<1x512xi32>
    %52 = arith.cmpi eq, %50, %51 : vector<1x512xi32>
    %53 = arith.extui %52 : vector<1x512xi1> to vector<1x512xi32>
    %54 = arith.sitofp %53 : vector<1x512xi32> to vector<1x512xf32>
    %c0_32 = arith.constant 0 : index
    %c0_33 = arith.constant 0 : index
    %c0_34 = arith.constant 0 : index
    %55 = vector.load %arg9[%c0_32, %c0_33, %c0_34] : memref<1x3x16xf32, #tpu.memory_space<vmem>>, vector<1x1x16xf32>
    %56 = vector.shape_cast %55 : vector<1x1x16xf32> to vector<16xf32>
    %57 = vector.broadcast %54 : vector<1x512xf32> to vector<16x512xf32>
    %58 = arith.mulf %38, %57 : vector<16x512xf32>
    %cst_35 = arith.constant dense<0.000000e+00> : vector<16xf32>
    %59 = vector.multi_reduction <add>, %58, %cst_35 [1] : vector<16x512xf32> to vector<16xf32>
    %60 = arith.addf %56, %59 : vector<16xf32>
    %c0_36 = arith.constant 0 : index
    %c0_37 = arith.constant 0 : index
    %c0_38 = arith.constant 0 : index
    %61 = vector.load %arg9[%c0_36, %c0_37, %c0_38] : memref<1x3x16xf32, #tpu.memory_space<vmem>>, vector<1x1x16xf32>
    %62 = vector.shape_cast %61 : vector<1x1x16xf32> to vector<16xf32>
    %63 = vector.shape_cast %60 : vector<16xf32> to vector<1x1x16xf32>
    tpu.vector_store %arg9[%c0_36, %c0_37, %c0_38], %63 {strides = array<i32>} : memref<1x3x16xf32, #tpu.memory_space<vmem>>, vector<1x1x16xf32>,
    %c1_i32 = arith.constant 1 : i32
    %64 = vector.broadcast %c1_i32 : i32 to vector<1x512xi32>
    %65 = arith.cmpi eq, %50, %64 : vector<1x512xi32>
    %66 = arith.extui %65 : vector<1x512xi1> to vector<1x512xi32>
    %67 = arith.sitofp %66 : vector<1x512xi32> to vector<1x512xf32>
    %c0_39 = arith.constant 0 : index
    %c1_40 = arith.constant 1 : index
    %c0_41 = arith.constant 0 : index
    %68 = vector.load %arg9[%c0_39, %c1_40, %c0_41] : memref<1x3x16xf32, #tpu.memory_space<vmem>>, vector<1x1x16xf32>
    %69 = vector.shape_cast %68 : vector<1x1x16xf32> to vector<16xf32>
    %70 = vector.broadcast %67 : vector<1x512xf32> to vector<16x512xf32>
    %71 = arith.mulf %38, %70 : vector<16x512xf32>
    %cst_42 = arith.constant dense<0.000000e+00> : vector<16xf32>
    %72 = vector.multi_reduction <add>, %71, %cst_42 [1] : vector<16x512xf32> to vector<16xf32>
    %73 = arith.addf %69, %72 : vector<16xf32>
    %c0_43 = arith.constant 0 : index
    %c1_44 = arith.constant 1 : index
    %c0_45 = arith.constant 0 : index
    %74 = vector.load %arg9[%c0_43, %c1_44, %c0_45] : memref<1x3x16xf32, #tpu.memory_space<vmem>>, vector<1x1x16xf32>
    %75 = vector.shape_cast %74 : vector<1x1x16xf32> to vector<16xf32>
    %76 = vector.shape_cast %73 : vector<16xf32> to vector<1x1x16xf32>
    tpu.vector_store %arg9[%c0_43, %c1_44, %c0_45], %76 {strides = array<i32>} : memref<1x3x16xf32, #tpu.memory_space<vmem>>, vector<1x1x16xf32>,
    %c0_46 = arith.constant 0 : index
    %c2_47 = arith.constant 2 : index
    %c0_48 = arith.constant 0 : index
    %77 = vector.load %arg9[%c0_46, %c2_47, %c0_48] : memref<1x3x16xf32, #tpu.memory_space<vmem>>, vector<1x1x16xf32>
    %78 = vector.shape_cast %77 : vector<1x1x16xf32> to vector<16xf32>
    %cst_49 = arith.constant dense<0.000000e+00> : vector<16xf32>
    %79 = vector.multi_reduction <add>, %38, %cst_49 [1] : vector<16x512xf32> to vector<16xf32>
    %80 = arith.addf %78, %79 : vector<16xf32>
    %c0_50 = arith.constant 0 : index
    %c2_51 = arith.constant 2 : index
    %c0_52 = arith.constant 0 : index
    %81 = vector.load %arg9[%c0_50, %c2_51, %c0_52] : memref<1x3x16xf32, #tpu.memory_space<vmem>>, vector<1x1x16xf32>
    %82 = vector.shape_cast %81 : vector<1x1x16xf32> to vector<16xf32>
    %83 = vector.shape_cast %80 : vector<16xf32> to vector<1x1x16xf32>
    tpu.vector_store %arg9[%c0_50, %c2_51, %c0_52], %83 {strides = array<i32>} : memref<1x3x16xf32, #tpu.memory_space<vmem>>, vector<1x1x16xf32>,
    %c1_i32_53 = arith.constant 1 : i32
    %84 = arith.cmpi eq, %arg1, %c1_i32_53 : i32
    %85 = arith.extui %84 : i1 to i32
    %c0_i32_54 = arith.constant 0 : i32
    %86 = arith.cmpi ne, %85, %c0_i32_54 : i32
    scf.if %86 {
      %c0_55 = arith.constant 0 : index
      %c2_56 = arith.constant 2 : index
      %c0_57 = arith.constant 0 : index
      %87 = vector.load %arg9[%c0_55, %c2_56, %c0_57] : memref<1x3x16xf32, #tpu.memory_space<vmem>>, vector<1x1x16xf32>
      %88 = vector.shape_cast %87 : vector<1x1x16xf32> to vector<1x16xf32>
      %cst_58 = arith.constant 1.000000e+00 : f32
      %89 = vector.broadcast %cst_58 : f32 to vector<1x16xf32>
      %90 = arith.maximumf %88, %89 : vector<1x16xf32>
      %91 = tpu.reciprocal %90 {approx = true} : vector<1x16xf32> -> vector<1x16xf32>
      %c0_59 = arith.constant 0 : index
      %c0_60 = arith.constant 0 : index
      %c0_61 = arith.constant 0 : index
      %92 = vector.load %arg8[%c0_59, %c0_60, %c0_61] : memref<1x128x16xf32, #tpu.memory_space<vmem>>, vector<1x128x16xf32>
      %93 = vector.shape_cast %92 : vector<1x128x16xf32> to vector<128x16xf32>
      %94 = vector.broadcast %91 : vector<1x16xf32> to vector<128x16xf32>
      %95 = arith.mulf %93, %94 : vector<128x16xf32>
      %c0_62 = arith.constant 0 : index
      %c0_63 = arith.constant 0 : index
      %c0_64 = arith.constant 0 : index
      %96 = vector.load %arg8[%c0_62, %c0_63, %c0_64] : memref<1x128x16xf32, #tpu.memory_space<vmem>>, vector<1x128x16xf32>
      %97 = vector.shape_cast %96 : vector<1x128x16xf32> to vector<128x16xf32>
      %98 = vector.shape_cast %95 : vector<128x16xf32> to vector<1x128x16xf32>
      tpu.vector_store %arg8[%c0_62, %c0_63, %c0_64], %98 {strides = array<i32>} : memref<1x128x16xf32, #tpu.memory_space<vmem>>, vector<1x128x16xf32>,
    } else {
    }
    return
  }
  func.func @transform_0(%arg0: i32, %arg1: i32) -> (i32, i32, i32) {
    %c0_i32 = arith.constant 0 : i32
    %c0_i32_0 = arith.constant 0 : i32
    return %arg0, %c0_i32, %arg1 : i32, i32, i32
  }
  func.func @transform_1(%arg0: i32, %arg1: i32) -> (i32, i32) {
    %c0_i32 = arith.constant 0 : i32
    %c0_i32_0 = arith.constant 0 : i32
    %c0_i32_1 = arith.constant 0 : i32
    return %c0_i32, %c0_i32_0 : i32, i32
  }
  func.func @transform_2(%arg0: i32, %arg1: i32) -> (i32, i32) {
    %c0_i32 = arith.constant 0 : i32
    %c0_i32_0 = arith.constant 0 : i32
    %c0_i32_1 = arith.constant 0 : i32
    return %c0_i32, %c0_i32_0 : i32, i32
  }
  func.func @transform_3(%arg0: i32, %arg1: i32) -> (i32, i32, i32) {
    %c0_i32 = arith.constant 0 : i32
    %c0_i32_0 = arith.constant 0 : i32
    return %arg0, %c0_i32, %arg1 : i32, i32, i32
  }
  func.func @transform_4(%arg0: i32, %arg1: i32) -> (i32, i32, i32) {
    %c0_i32 = arith.constant 0 : i32
    %c0_i32_0 = arith.constant 0 : i32
    return %arg0, %c0_i32, %arg1 : i32, i32, i32
  }
  func.func @transform_5(%arg0: i32, %arg1: i32) -> (i32, i32, i32) {
    %c0_i32 = arith.constant 0 : i32
    %c0_i32_0 = arith.constant 0 : i32
    return %arg0, %c0_i32, %arg1 : i32, i32, i32
  }
  func.func @transform_6(%arg0: i32, %arg1: i32) -> (i32, i32, i32) {
    %c0_i32 = arith.constant 0 : i32
    %c0_i32_0 = arith.constant 0 : i32
    %c0_i32_1 = arith.constant 0 : i32
    return %arg0, %c0_i32, %c0_i32_0 : i32, i32, i32
  }
  func.func @transform_7(%arg0: i32, %arg1: i32) -> (i32, i32, i32) {
    %c0_i32 = arith.constant 0 : i32
    %c0_i32_0 = arith.constant 0 : i32
    %c0_i32_1 = arith.constant 0 : i32
    return %arg0, %c0_i32, %c0_i32_0 : i32, i32, i32
  }
}

</mosaic_0001>

<bundles_post_ra>
// kernel: tpu_custom_call.1
= control target key start
LH: loop header
LB: loop body
LE: loop exit
PB: predicated region body
PF: predicated region fallthrough
CT: control target
= control target key end

     0   :  { %s4165_s0 = inlined_call_operand.vmem [shape: f32[2,3,1024], index: 0, kind: input, shape index: {}]   ;;  %s4166_s1 = inlined_call_operand.vmem [shape: f32[128,3], index: 1, kind: input, shape index: {}]   ;;  %s4167_s2 = inlined_call_operand.vmem [shape: f32[128,1], index: 2, kind: input, shape index: {}]   ;;  %s4168_s3 = inlined_call_operand.vmem [shape: s32[2,1,1024], index: 3, kind: input, shape index: {}]   ;;  %s4169_s4 = inlined_call_operand.vmem [shape: s32[2,1,1024], index: 4, kind: input, shape index: {}]   ;;  %s4170_s5 = inlined_call_operand.hbm [shape: f32[2,128,1024], index: 5, kind: output, shape index: {0}]   ;;  %s4171_s6 = inlined_call_operand.vmem [shape: f32[2,128,16], index: 6, kind: output, shape index: {1}]   ;;  %s4172_s7 = inlined_call_operand.vmem [shape: f32[2,3,16], index: 7, kind: output, shape index: {2}]  }
   0x1   :  { %4233 = sst [smem:[#allocation74_spill]] %s4171_s6 }
   0x2   :  { %13 = vsyncpa [#allocation3], 0 }
   0x3   :  { %15 = vsyncpa [#allocation3 + $0x1], 0  ;;  %s2784_s24 = smov 0   ;;  %s2786_s25 = smov 0  }
   0x4   :  { %s2788_s26 = smov 0   ;;  %s2790_s27 = smov 0  }
   0x5   :  { %s2792_s28 = smov 0   ;;  %s2794_s29 = smov 0  }
   0x6   :  { %s2796_s30 = smov 0   ;;  %s2798_s8 = smov 0  }
   0x7 LB: > { %4234 = sst [smem:[#allocation5_spill]] %s2705_s24  ;;  %s2196_s9 = sadd.s32 4294967295, %s2733_s8   ;;  %s2733_s8 = sphi %s2798_s8, %s21_s8   ;;  %s2729_s30 = sphi %s2796_s30, %s4399_s30   ;;  %s2725_s29 = sphi %s2794_s29, %s4398_s29   ;;  %s2721_s28 = sphi %s2792_s28, %s4397_s28   ;;  %s2717_s27 = sphi %s2790_s27, %s4396_s27   ;;  %s2713_s26 = sphi %s2788_s26, %s4395_s26   ;;  %s2709_s25 = sphi %s2786_s25, %s4401_s25   ;;  %s2705_s24 = sphi %s2784_s24, %s4400_s24  }
   0x8   : > { %4235 = sst [smem:[#allocation6_spill]] %s2713_s26  ;;  %s2197_s10 = sadd.s32 4294967294, %s2733_s8  }
   0x9   : > { %4236 = sst [smem:[#allocation7_spill]] %s2725_s29  ;;  %s30_s11 = sadd.s32 1, %s2725_s29 }
   0xa   : > { %4237 = sst [smem:[#allocation8_spill]] %s2729_s30  ;;  %p31_p0 = scmp.ge.s32.totalorder %s30_s11, 2 }
   0xb   : > { %4238 = sst [smem:[#allocation9_spill]] %s2733_s8  ;;  %s33_s12 = sadd.s32 1, %s2729_s30 }
   0xc   : > { %p178_p1 = scmp.ne.s32.totalorder %s2713_s26, %s2709_s25  ;;  %p179_p2 = scmp.eq.s32.totalorder %s2196_s9, 3 }
   0xd   : > { %s4403_s11 = smov (%p31_p0, %s30_s11), 0  ;;  %s4405_s12 = smov (!%p31_p0, %s33_s12), %s2729_s30 }
   0xe   : > { %4239 = sst [smem:[#allocation10_spill]] %s4403_s11  ;;  %s164_s13 = ssub.s32 %s2725_s29, %s4403_s11 }
   0xf   : > { %p2835_p3 = por %p179_p2, %p178_p1  ;;  %p35_p4 = scmp.ge.s32.totalorder %s4405_s12, 2 }
  0x10   : > { %p184_p5 = scmp.ne.s32.totalorder %s2709_s25, %s2705_s24  ;;  %p185_p6 = scmp.eq.s32.totalorder %s2197_s10, 3 }
  0x11   : > { %p2200_p7 = scmp.ge.s32.totalorder %s2733_s8, 1  ;;  %s4407_s12 = smov (%p35_p4, %s4405_s12), 0 }
  0x12   : > { %4241 = sst [smem:[#allocation11_spill]] %s4407_s12  ;;  %p2844_p8 = por %p185_p6, %p184_p5 }
  0x13   : > { %p298_p9 = scmp.lt.s32.totalorder %s2733_s8, 5  ;;  %s163_s16 = ssub.s32 %s2729_s30, %s4407_s12 }
  0x14   : > { %s4242_s15 = scalar_select %p2844_p8, 1, 0 }
  0x15   : > { %s168_s17 = sadd.s32 1, %s2713_s26  ;;  %s165_s18 = sor.u32 %s164_s13, %s163_s16 }
  0x16   : > { %4243 = sst [smem:[#allocation12_spill]] %s4242_s15  ;;  %p299_p10 = pnand %p2200_p7, %p298_p9 }
  0x17   : > { %p166_p11 = scmp.eq.s32.totalorder %s165_s18, 0 }
  0x18   : > { %302 = sbr.rel (%p299_p10) target bundleno = 730 (0x2da), region = 40 }
  0x19   : > { %s2853_s19 = scalar_select %p166_p11, %s2713_s26, %s168_s17  }
  0x1b   : > { %4244 = sst [smem:[#allocation13_spill]] %s2853_s19 }
  0x1d   : > { %s4177_s20 = sand.u32 1, %s2709_s25   ;;  %s2857_s21 = sshll.u32 %s2717_s27, 2 }
  0x1e   : > { %s2201_s22 = sshll.u32 %s4177_s20, 9  ;;  %p360_p12 = scmp.lt.s32.totalorder %s2721_s28, 1 }
  0x1f   : > { %p362_p13 = scmp.lt.s32.totalorder %s2857_s21, 7  ;;  %s4245_s6 = sld [smem:[#allocation74_spill]] }
  0x20   : > { %s361_s23 = scalar_select %p360_p12, %s2721_s28, 1 }
  0x21   : > { %s363_s9 = scalar_select %p362_p13, %s2857_s21, 7 }
  0x22   : > { %s2203_s10 = sshll.u32 %s361_s23, 3  ;;  %s2232_s13 = sshll.u32 %s361_s23, 7 }
  0x23   : > { %s2865_s16 = sadd.s32 %s2203_s10, %s363_s9  ;;  %s2211_s17 = sshll.u32 %s361_s23, 2 }
  0x24   : > { %s2204_s11 = sshll.u32 %s2865_s16, 2  ;;  %s376_s20 = scalar_lea.vmem %s4168_s3, %s2865_s16 }
  0x25   : > { %s2870_s12 = scalar_lea.vmem %s4245_s6, %s2232_s13  ;;  %s2880_s15 = scalar_lea.vmem %s4165_s0, %s2204_s11 }
  0x26   : > { %s385_s24 = scalar_lea.vmem %s4169_s4, %s2865_s16  ;;  %s2889_s13 = scalar_lea.vmem %s4172_s7, %s2211_s17 }
  0x27   : > { %s2891_s6 = scalar_lea.vmem [#allocation2], %s2201_s22  ;;  %p2212_p0 = scmp.ne.s32.totalorder %s2717_s27, 0 }
  0x29   : > { %401 = sbr.rel (%p2212_p0) target bundleno = 56 (0x38), region = 44 }
  0x2e   : > { %vm402_vm0 = vcmask 130048   ;;  %vm419_vm1 = vcmask 124928   ;;  %v2735_v0 = vmov 0.0  }
  0x2f   : > { %403 = vst.msk [vmem:[%s2870_s12] sm:$0xff] %vm402_vm0, %v2735_v0  ;;  %404 = vst.msk [vmem:[%s2870_s12 + $0x8] sm:$0xff] %vm402_vm0, %v2735_v0 }
  0x30   : > { %405 = vst.msk [vmem:[%s2870_s12 + $0x10] sm:$0xff] %vm402_vm0, %v2735_v0  ;;  %406 = vst.msk [vmem:[%s2870_s12 + $0x18] sm:$0xff] %vm402_vm0, %v2735_v0 }
  0x31   : > { %407 = vst.msk [vmem:[%s2870_s12 + $0x20] sm:$0xff] %vm402_vm0, %v2735_v0  ;;  %408 = vst.msk [vmem:[%s2870_s12 + $0x28] sm:$0xff] %vm402_vm0, %v2735_v0 }
  0x32   : > { %409 = vst.msk [vmem:[%s2870_s12 + $0x30] sm:$0xff] %vm402_vm0, %v2735_v0  ;;  %410 = vst.msk [vmem:[%s2870_s12 + $0x38] sm:$0xff] %vm402_vm0, %v2735_v0 }
  0x33   : > { %411 = vst.msk [vmem:[%s2870_s12 + $0x40] sm:$0xff] %vm402_vm0, %v2735_v0  ;;  %412 = vst.msk [vmem:[%s2870_s12 + $0x48] sm:$0xff] %vm402_vm0, %v2735_v0 }
  0x34   : > { %413 = vst.msk [vmem:[%s2870_s12 + $0x50] sm:$0xff] %vm402_vm0, %v2735_v0  ;;  %414 = vst.msk [vmem:[%s2870_s12 + $0x58] sm:$0xff] %vm402_vm0, %v2735_v0 }
  0x35   : > { %415 = vst.msk [vmem:[%s2870_s12 + $0x60] sm:$0xff] %vm402_vm0, %v2735_v0  ;;  %416 = vst.msk [vmem:[%s2870_s12 + $0x68] sm:$0xff] %vm402_vm0, %v2735_v0 }
  0x36   : > { %417 = vst.msk [vmem:[%s2870_s12 + $0x70] sm:$0xff] %vm402_vm0, %v2735_v0  ;;  %418 = vst.msk [vmem:[%s2870_s12 + $0x78] sm:$0xff] %vm402_vm0, %v2735_v0 }
  0x37   : > { %420 = vst.msk [vmem:[%s2889_s13] sm:$0x7] %vm419_vm1, %v2735_v0 }
  0x38 PF: > { %v4183_v1 = vlaneseq  ;;  %v1800_v2 = vld [vmem:[%s385_s24] sm:$0xf]  ;;  %v2736_v7 = vmov 0.0   ;;  %v4198_v33 = vmov 0   ;;  %v4184_v34 = vmov 1   ;;  %v3006_v35 = vld [vmem:[%s4166_s1 + $0x10] sm:$0xff] }
  0x39   : > { %vm1801_vm2 = vcmp.eq.s32.totalorder %v1800_v2, 0  ;;  %vm1863_vm3 = vcmp.eq.s32.totalorder %v1800_v2, 1  ;;  %v1321_v4 = vld [vmem:[%s376_s20] sm:$0xf]  ;;  %v3012_v36 = vld [vmem:[%s4166_s1 + $0x18] sm:$0xff]  ;;  %v3018_v37 = vld [vmem:[%s4166_s1 + $0x28] sm:$0xff] }
  0x3a   : > { %v2929_v3 = vshrl.u32 %v4183_v1, 7  ;;  %v2942_v8 = vsel %vm1801_vm2, 1.0, %v2736_v7  ;;  %v2944_v9 = vsel %vm1863_vm3, 1.0, %v2736_v7  ;;  %v3024_v38 = vld [vmem:[%s4166_s1 + $0x38] sm:$0xff]  ;;  %v3029_v39 = vld [vmem:[%s4166_s1] sm:$0xff]  ;;  %v3035_v40 = vld [vmem:[%s4166_s1 + $0x48] sm:$0xff] }
  0x3b   : > { %4248 = vst [vmem:[#allocation16_spill] sm:$0xff] %v2942_v8  ;;  %4249 = vst [vmem:[#allocation17_spill] sm:$0xff] %v2944_v9  ;;  %v3042_v41 = vld [vmem:[%s4166_s1 + $0x58] sm:$0xff]  ;;  %v422_v42 = vld [vmem:[%s4166_s1 + $0x8] sm:$0xff]  ;;  %v4186_v51 = vmov 2   ;;  %vm1857_vm12 = vcmask 130112  }
  0x3c   : > { %4246 = vst [vmem:[#allocation14_spill] sm:$0xff] %v2929_v3  ;;  %v2937_v5 = vsub.s32 1, %v2929_v3  ;;  %v2940_v6 = vsub.s32 3, %v2929_v3  ;;  %v2949_v12 = vsub.s32 0, %v2929_v3  ;;  %v2960_v15 = vsub.s32 2, %v2929_v3  ;;  %v3053_v43 = vld [vmem:[%s4166_s1 + $0x68] sm:$0xff] }
  0x3d   : > { %v1324_v18 = vadd.s32 8, %v2929_v3  ;;  %v3059_v44 = vld [vmem:[%s4166_s1 + $0x20] sm:$0xff]  ;;  %v3064_v45 = vld [vmem:[%s4166_s1 + $0x78] sm:$0xff]  ;;  %v3071_v46 = vld [vmem:[%s4166_s1 + $0x30] sm:$0xff]  ;;  %vm1861_vm13 = vcmask 122880   ;;  %vm1783_vm14 = vcmask 130048  }
  0x3e   : > { %4247 = vst [vmem:[#allocation15_spill] sm:$0xff] %v2940_v6  ;;  %v1332_v10 = vrot.slane %v1321_v4, %v2937_v5  ;;  %v1340_v11 = vrot.slane %v1321_v4, %v2940_v6  ;;  %4250 = vst [vmem:[#allocation18_spill] sm:$0xff] %v2949_v12  ;;  %v2953_v13 = vrot.slane %v2942_v8, %v2937_v5  ;;  %v3078_v47 = vld [vmem:[%s4166_s1 + $0x40] sm:$0xff]  ;;  %v3086_v49 = vld [vmem:[%s4166_s1 + $0x50] sm:$0xff]  ;;  %p2225_p1 = scmp.ne.s32.totalorder %s2717_s27, 1 }
  0x3f   : > { %v2957_v14 = vrot.slane %v2944_v9, %v2937_v5  ;;  %v1328_v20 = vrot.slane %v1321_v4, %v2949_v12  ;;  %v1336_v21 = vrot.slane %v1321_v4, %v2960_v15  ;;  %v2975_v22 = vrot.slane %v2942_v8, %v2949_v12  ;;  %4263 = vst [vmem:[#allocation31_spill] sm:$0xff] %v3064_v45  ;;  %v3095_v55 = vld [vmem:[%s4166_s1 + $0x60] sm:$0xff]  ;;  %v3107_v61 = vld [vmem:[%s4166_s1 + $0x70] sm:$0xff] }
  0x40   : > { %4251 = vst [vmem:[#allocation19_spill] sm:$0xff] %v2953_v13  ;;  %vm1342_vm4 = vcmp.eq.s32.totalorder %v1332_v10, %v2929_v3  ;;  %vm1344_vm5 = vcmp.eq.s32.totalorder %v1340_v11, %v2929_v3  ;;  %v2979_v23 = vrot.slane %v2944_v9, %v2949_v12  ;;  %vm1346_vm8 = vcmp.eq.s32.totalorder %v1332_v10, %v1324_v18  ;;  %v1033_v56 = vld [vmem:[%s4167_s2] sm:$0xff]  ;;  %v1034_v10 = vld [vmem:[%s4167_s2 + $0x8] sm:$0xff] }
  0x41   : > { %4252 = vst [vmem:[#allocation20_spill] sm:$0xff] %v2957_v14  ;;  %v2964_v16 = vsel %vm1342_vm4, 1.0, %v2736_v7  ;;  %v2966_v17 = vsel %vm1344_vm5, 1.0, %v2736_v7  ;;  %4255 = vst [vmem:[#allocation23_spill] sm:$0xff] %v2975_v22  ;;  %vm1341_vm6 = vcmp.eq.s32.totalorder %v1328_v20, %v2929_v3  ;;  %vm1343_vm7 = vcmp.eq.s32.totalorder %v1336_v21, %v2929_v3  ;;  %v1039_v14 = vld [vmem:[%s4167_s2 + $0x30] sm:$0xff] }
  0x42   : > { %4253 = vst [vmem:[#allocation21_spill] sm:$0xff] %v2964_v16  ;;  %4254 = vst [vmem:[#allocation22_spill] sm:$0xff] %v2966_v17  ;;  %v2440_v19 = vpack.i.bf16 %v2966_v17, %v2964_v16  ;;  %v2983_v24 = vsel %vm1341_vm6, 1.0, %v2736_v7  ;;  %vm1348_vm9 = vcmp.eq.s32.totalorder %v1340_v11, %v1324_v18  ;;  %v2985_v25 = vsel %vm1343_vm7, 1.0, %v2736_v7 }
  0x43   : > { %4256 = vst [vmem:[#allocation24_spill] sm:$0xff] %v2979_v23  ;;  %4257 = vst [vmem:[#allocation25_spill] sm:$0xff] %v2983_v24  ;;  %v2987_v26 = vsel %vm1346_vm8, 1.0, %v2736_v7  ;;  %v2526_v27 = vpack.i.bf16 %v2985_v25, %v2983_v24  ;;  %v2991_v28 = vsel %vm1348_vm9, 1.0, %v2736_v7  ;;  %vm1345_vm10 = vcmp.eq.s32.totalorder %v1328_v20, %v1324_v18 }
  0x44   : > { %2441 = vxpose.xlu1.b32.start [1/2] (short) %v2440_v19, 128  ;;  %4258 = vst [vmem:[#allocation26_spill] sm:$0xff] %v2985_v25  ;;  %4259 = vst [vmem:[#allocation27_spill] sm:$0xff] %v2987_v26  ;;  %vm1347_vm11 = vcmp.eq.s32.totalorder %v1336_v21, %v1324_v18  ;;  %v2442_v29 = vpack.i.bf16 %v2991_v28, %v2987_v26  ;;  %v2995_v30 = vsel %vm1345_vm10, 1.0, %v2736_v7  ;;  %v1036_v21 = vld [vmem:[%s4167_s2 + $0x18] sm:$0xff]  ;;  %v4264_v26 = vmov 2  }
  0x45   : > { %4260 = vst [vmem:[#allocation28_spill] sm:$0xff] %v2991_v28  ;;  %4261 = vst [vmem:[#allocation29_spill] sm:$0xff] %v2995_v30  ;;  %v2997_v31 = vsel %vm1347_vm11, 1.0, %v2736_v7  ;;  %2527 = vxpose.xlu0.b32.start [1/2] (short) %v2526_v27, 128 }
  0x46   : > { %4262 = vst [vmem:[#allocation30_spill] sm:$0xff] %v2997_v31  ;;  %v2528_v32 = vpack.i.bf16 %v2997_v31, %v2995_v30 }
  0x48   : > { %2443 = vxpose.xlu1.b32.end [2/2] (short) %v2442_v29, 128 }
  0x49   : > { %2529 = vxpose.xlu0.b32.end [2/2] (short) %v2528_v32, 128 }
  0x66   : > { %2524 = vset.pattern.permute.xlu1 %v4198_v33 }
  0x72   : > { %2610 = vset.pattern.permute.xlu0 %v4184_v34 }
  0x9e   : > { %450 = vperm.xlu1 %2524, %v3006_v35  }
  0xa2   : > { %455 = vperm.xlu1 %2524, %v3012_v36  }
  0xa6   : > { %465 = vperm.xlu1 %2524, %v3018_v37  }
  0xaa   : > { %475 = vperm.xlu1 %2524, %v3024_v38   ;;  %606 = vperm.xlu0 %2610, %v3029_v39  }
  0xae   : > { %485 = vperm.xlu1 %2524, %v3035_v40   ;;  %2611 = vset.pattern.permute.xlu0 %v4198_v33 }
  0xaf   : > { %440 = vperm.xlu0 %2611, %v3029_v39  }
  0xb2   : > { %495 = vperm.xlu1 %2524, %v3042_v41  }
  0xb3   : > { %445 = vperm.xlu0 %2611, %v422_v42  }
  0xb6   : > { %505 = vperm.xlu1 %2524, %v3053_v43  }
  0xb7   : > { %460 = vperm.xlu0 %2611, %v3059_v44  }
  0xba   : > { %515 = vperm.xlu1 %2524, %v3064_v45  }
  0xbb   : > { %470 = vperm.xlu0 %2611, %v3071_v46  }
  0xbe   : > { %2525 = vset.pattern.permute.xlu1 %v4184_v34 }
  0xbf   : > { %610 = vperm.xlu1 %2525, %v422_v42   ;;  %480 = vperm.xlu0 %2611, %v3078_v47  }
  0xc0   : > { %v3080_v48 = vpop.trf.xlu1 }
  0xc1   : > { %v2530_v50 = vpop.trf.xlu0 }
  0xc2   : > { %v2534_v53 = vunpack.i.h.bf16 %v2530_v50  ;;  %v2531_v54 = vunpack.i.l.bf16 %v2530_v50  ;;  %v1038_v50 = vld [vmem:[%s4167_s2 + $0x28] sm:$0xff] }
  0xc3   : > { %2612 = vset.pattern.permute.xlu1 %v4186_v51  ;;  %490 = vperm.xlu0 %2611, %v3086_v49  }
  0xc4   : > { %v3089_v52 = vpop.trf.xlu1  ;;  %825 = vperm.xlu1 %2612, %v422_v42  }
  0xc5   : > { %v2535_v57 = vpop.trf.xlu0 }
  0xc6   : > { %v2539_v58 = vunpack.i.h.bf16 %v2535_v57  ;;  %v2536_v59 = vunpack.i.l.bf16 %v2535_v57 }
  0xc7   : > { %500 = vperm.xlu0 %2611, %v3095_v55  }
  0xc8   : > { %v3100_v60 = vpop.trf.xlu1  ;;  %2613 = vset.pattern.permute.xlu1 %v4198_v33  ;;  %v3109_v62 = vpack.c.bf16 %v2536_v59, %v2531_v54  ;;  %v3111_v63 = vpack.c.bf16 %v2539_v58, %v2534_v53 }
  0xc9   : > { %1051 = vperm.xlu1 %2613, %v1033_v56   ;;  %v2540_v0 = vpop.trf.xlu0  ;;  %v1035_v56 = vld [vmem:[%s4167_s2 + $0x10] sm:$0xff] }
  0xca   : > { %v2544_v4 = vunpack.i.h.bf16 %v2540_v0  ;;  %v2541_v7 = vunpack.i.l.bf16 %v2540_v0 }
  0xcb   : > { %510 = vperm.xlu0 %2611, %v3107_v61  }
  0xcc   : > { %v3113_v2 = vpop.trf.xlu1 }
  0xcd   : > { %2614 = vset.pattern.permute.xlu1 %v4184_v34  ;;  %v2545_v11 = vpop.trf.xlu0 }
  0xce   : > { %614 = vperm.xlu1 %2614, %v3006_v35   ;;  %v2549_v18 = vunpack.i.h.bf16 %v2545_v11  ;;  %v2546_v19 = vunpack.i.l.bf16 %v2545_v11  ;;  %v1037_v11 = vld [vmem:[%s4167_s2 + $0x20] sm:$0xff] }
  0xcf   : > { %1056 = vperm.xlu0 %2611, %v1034_v10  }
  0xd0   : > { %v3121_v20 = vpop.trf.xlu1  ;;  %v3127_v27 = vpack.c.bf16 %v2546_v19, %v2541_v7  ;;  %v3129_v29 = vpack.c.bf16 %v2549_v18, %v2544_v4 }
  0xd1   : > { %v3131_v32 = vpop.trf.xlu0 }
  0xd2   : > { %618 = vperm.xlu1 %2614, %v3012_v36  }
  0xd3   : > { %1066 = vperm.xlu0 %2611, %v1036_v21   ;;  %v1040_v21 = vld [vmem:[%s4167_s2 + $0x38] sm:$0xff] }
  0xd4   : > { %v3133_v42 = vpop.trf.xlu1 }
  0xd5   : > { %v3139_v53 = vpop.trf.xlu0 }
  0xd6   : > { %2615 = vset.pattern.permute.xlu1 %v4186_v51 }
  0xd7   : > { %833 = vperm.xlu1 %2615, %v3012_v36   ;;  %1076 = vperm.xlu0 %2611, %v1038_v50  }
  0xd8   : > { %v3142_v54 = vpop.trf.xlu1 }
  0xd9   : > { %v3147_v57 = vpop.trf.xlu0 }
  0xdb   : > { %2616 = vset.pattern.permute.xlu1 %v4198_v33  ;;  %2620 = vset.pattern.permute.xlu0 %v4186_v51 }
  0xdc   : > { %v3150_v58 = vpop.trf.xlu1  ;;  %1061 = vperm.xlu1 %2616, %v1035_v56   ;;  %821 = vperm.xlu0 %2620, %v3029_v39  }
  0xdd   : > { %v3154_v59 = vpop.trf.xlu0 }
  0xe0   : > { %v3156_v36 = vpop.trf.xlu1  ;;  %2617 = vset.pattern.permute.xlu1 %v4184_v34  ;;  %829 = vperm.xlu0 %2620, %v3006_v35  }
  0xe1   : > { %622 = vperm.xlu1 %2617, %v3059_v44   ;;  %v3161_v0 = vpop.trf.xlu0 }
  0xe4   : > { %v3163_v4 = vpop.trf.xlu1  ;;  %837 = vperm.xlu0 %2620, %v3059_v44  }
  0xe5   : > { %626 = vperm.xlu1 %2617, %v3018_v37   ;;  %v3167_v7 = vpop.trf.xlu0 }
  0xe8   : > { %v3169_v39 = vpop.trf.xlu1  ;;  %845 = vperm.xlu0 %2620, %v3071_v46  }
  0xe9   : > { %2618 = vset.pattern.permute.xlu1 %v4186_v51  ;;  %v3174_v10 = vpop.trf.xlu0 }
  0xea   : > { %841 = vperm.xlu1 %2618, %v3018_v37   ;;  %v2581_v16 = vunpack.i.l.bf16 %v3174_v10 }
  0xec   : > { %v3176_v35 = vpop.trf.xlu1  ;;  %853 = vperm.xlu0 %2620, %v3078_v47  }
  0xed   : > { %v3183_v44 = vpop.trf.xlu0 }
  0xee   : > { %2619 = vset.pattern.permute.xlu1 %v4198_v33  ;;  %v2589_v13 = vunpack.i.h.bf16 %v3183_v44 }
  0xef   : > { %1071 = vperm.xlu1 %2619, %v1037_v11   ;;  %v1042_v11 = vld [vmem:[%s4167_s2 + $0x48] sm:$0xff] }
  0xf0   : > { %v2504_v18 = vpop.trf.xlu1  ;;  %861 = vperm.xlu0 %2620, %v3086_v49  }
  0xf1   : > { %v2590_v37 = vpop.trf.xlu0  ;;  %v2508_v1 = vunpack.i.h.bf16 %v2504_v18 }
  0xf2   : > { %v2594_v25 = vunpack.i.h.bf16 %v2590_v37  ;;  %v2591_v30 = vunpack.i.l.bf16 %v2590_v37 }
  0xf3   : > { %2621 = vset.pattern.permute.xlu1 %v4184_v34  ;;  %v2505_v34 = vunpack.i.l.bf16 %v2504_v18 }
  0xf4   : > { %v2509_v19 = vpop.trf.xlu1  ;;  %630 = vperm.xlu1 %2621, %v3071_v46   ;;  %2628 = vset.pattern.permute.xlu0 %v4198_v33 }
  0xf5   : > { %v2595_v50 = vpop.trf.xlu0  ;;  %1086 = vperm.xlu0 %2628, %v1040_v21   ;;  %v2513_v9 = vunpack.i.h.bf16 %v2509_v19  ;;  %v2510_v28 = vunpack.i.l.bf16 %v2509_v19  ;;  %v1044_v21 = vld [vmem:[%s4167_s2 + $0x58] sm:$0xff] }
  0xf6   : > { %v2599_v45 = vunpack.i.h.bf16 %v2595_v50 }
  0xf7   : > { %v1555_v37 = vpack.c.bf16 %v2510_v28, %v2505_v34  ;;  %v2490_v28 = vunpack.i.l.bf16 %v3163_v4 }
  0xf8   : > { %v2514_v56 = vpop.trf.xlu1  ;;  %634 = vperm.xlu1 %2621, %v3024_v38  }
  0xf9   : > { %v2600_v51 = vpop.trf.xlu0  ;;  %v2515_v3 = vunpack.i.l.bf16 %v2514_v56  ;;  %v2518_v46 = vunpack.i.h.bf16 %v2514_v56  ;;  %1096 = vperm.xlu0 %2628, %v1042_v11   ;;  %v2596_v56 = vunpack.i.l.bf16 %v2595_v50  ;;  %v4265_v50 = vmov 0  }
  0xfa   : > { %v2601_v18 = vunpack.i.l.bf16 %v2600_v51  ;;  %v2604_v8 = vunpack.i.h.bf16 %v2600_v51  ;;  %v2500_v51 = vunpack.i.l.bf16 %v3176_v35 }
  0xfc   : > { %v2519_v31 = vpop.trf.xlu1  ;;  %2622 = vset.pattern.permute.xlu1 %v4264_v26 }
  0xfd   : > { %849 = vperm.xlu1 %2622, %v3024_v38   ;;  %v2520_v33 = vunpack.i.l.bf16 %v2519_v31  ;;  %v2523_v17 = vunpack.i.h.bf16 %v2519_v31  ;;  %v2605_v11 = vpop.trf.xlu0  ;;  %1106 = vperm.xlu0 %2628, %v1044_v21   ;;  %v1046_v31 = vld [vmem:[%s4167_s2 + $0x68] sm:$0xff]  ;;  %v2495_v38 = vunpack.i.l.bf16 %v3169_v39 }
  0xfe   : > { %v2606_v24 = vunpack.i.l.bf16 %v2605_v11  ;;  %v2609_v22 = vunpack.i.h.bf16 %v2605_v11  ;;  %v2584_v11 = vunpack.i.h.bf16 %v3174_v10  ;;  %v2571_v10 = vunpack.i.l.bf16 %v3161_v0 }
  0xff   : > { %v1556_v23 = vpack.c.bf16 %v2520_v33, %v2515_v3  ;;  %v1572_v19 = vpack.c.bf16 %v2523_v17, %v2518_v46  ;;  %v1571_v3 = vpack.c.bf16 %v2513_v9, %v2508_v1  ;;  %v2498_v17 = vunpack.i.h.bf16 %v3169_v39 }
 0x100   : > { %v2503_v33 = vunpack.i.h.bf16 %v3176_v35  ;;  %v1548_v46 = vpack.c.bf16 %v2606_v24, %v2601_v18  ;;  %v1564_v21 = vpack.c.bf16 %v2609_v22, %v2604_v8  ;;  %v1547_v1 = vpack.c.bf16 %v2596_v56, %v2591_v30 }
 0x101   : > { %2233 = vmatprep.subr.bf16.mxu0 %v1556_v23  ;;  %2297 = vmatprep.subr.bf16.mxu1 %v1572_v19  ;;  %v2586_v23 = vunpack.i.l.bf16 %v3183_v44  ;;  %v1563_v9 = vpack.c.bf16 %v2599_v45, %v2594_v25  ;;  %v1554_v24 = vpack.c.bf16 %v2500_v51, %v2495_v38  ;;  %v2485_v8 = vunpack.i.l.bf16 %v3156_v36 }
 0x102   : > { %2623 = vset.pattern.permute.xlu1 %v4265_v50  ;;  %1116 = vperm.xlu0 %2628, %v1046_v31   ;;  %v2493_v22 = vunpack.i.h.bf16 %v3163_v4  ;;  %v1570_v34 = vpack.c.bf16 %v2503_v33, %v2498_v17  ;;  %v2574_v39 = vunpack.i.h.bf16 %v3161_v0  ;;  %v4266_v35 = vmov 1  }
 0x103   : > { %1081 = vperm.xlu1 %2623, %v1039_v14   ;;  %2234 = vmatpush3.bf16.msra.mxu0 %v1548_v46  ;;  %v2488_v14 = vunpack.i.h.bf16 %v3156_v36  ;;  %v2475_v25 = vunpack.i.l.bf16 %v3142_v54  ;;  %v2579_v30 = vunpack.i.h.bf16 %v3167_v7  ;;  %v2576_v45 = vunpack.i.l.bf16 %v3167_v7 }
 0x104   : > { %2298 = vmatpush3.bf16.msra.mxu1 %v1564_v21  ;;  %2235 = vmatprep.subr.bf16.mxu0 %v1555_v37  ;;  %v1546_v4 = vpack.c.bf16 %v2586_v23, %v2581_v16  ;;  %v1562_v44 = vpack.c.bf16 %v2589_v13, %v2584_v11  ;;  %v1553_v36 = vpack.c.bf16 %v2490_v28, %v2485_v8  ;;  %v2480_v0 = vunpack.i.l.bf16 %v3150_v58  ;;  %v1048_v21 = vld [vmem:[%s4167_s2 + $0x78] sm:$0xff] }
 0x105   : > { %2299 = vmatprep.subr.bf16.mxu1 %v1571_v3  ;;  %v2483_v18 = vunpack.i.h.bf16 %v3150_v58  ;;  %v2478_v56 = vunpack.i.h.bf16 %v3142_v54  ;;  %v1569_v19 = vpack.c.bf16 %v2493_v22, %v2488_v14  ;;  %v2564_v7 = vunpack.i.h.bf16 %v3147_v57 }
 0x106   : > { %2634 = vset.pattern.permute.xlu0 %v4264_v26  ;;  %v2561_v31 = vunpack.i.l.bf16 %v3147_v57  ;;  %v2569_v13 = vunpack.i.h.bf16 %v3154_v59  ;;  %v2566_v16 = vunpack.i.l.bf16 %v3154_v59  ;;  %v1561_v38 = vpack.c.bf16 %v2579_v30, %v2574_v39 }
 0x107   : > { %2624 = vset.pattern.permute.xlu1 %v4266_v35  ;;  %2236 = vmatpush3.bf16.msra.mxu0 %v1547_v1  ;;  %v1552_v54 = vpack.c.bf16 %v2480_v0, %v2475_v25  ;;  %v1568_v58 = vpack.c.bf16 %v2483_v18, %v2478_v56  ;;  %v2470_v51 = vunpack.i.l.bf16 %v3133_v42  ;;  %v2465_v57 = vunpack.i.l.bf16 %v3121_v20 }
 0x108   : > { %2300 = vmatpush3.bf16.msra.mxu1 %v1563_v9  ;;  %638 = vperm.xlu1 %2624, %v3078_v47   ;;  %v1545_v47 = vpack.c.bf16 %v2576_v45, %v2571_v10  ;;  %v2473_v37 = vunpack.i.h.bf16 %v3133_v42  ;;  %v2468_v59 = vunpack.i.h.bf16 %v3121_v20  ;;  %v2551_v3 = vunpack.i.l.bf16 %v3131_v32  ;;  %v437_v20 = vld [vmem:[%s2880_s15] ss:$4 sm:$0xf] }
 0x109   : > { %2237 = vmatprep.subr.bf16.mxu0 %v1554_v24  ;;  %2301 = vmatprep.subr.bf16.mxu1 %v1570_v34  ;;  %v2556_v17 = vunpack.i.l.bf16 %v3139_v53  ;;  %v1544_v33 = vpack.c.bf16 %v2566_v16, %v2561_v31  ;;  %v1560_v46 = vpack.c.bf16 %v2569_v13, %v2564_v7  ;;  %v2554_v11 = vunpack.i.h.bf16 %v3131_v32 }
 0x10a   : > { %869 = vperm.xlu0 %2634, %v3095_v55   ;;  %v2559_v23 = vunpack.i.h.bf16 %v3139_v53  ;;  %v1551_v42 = vpack.c.bf16 %v2470_v51, %v2465_v57  ;;  %v1567_v1 = vpack.c.bf16 %v2473_v37, %v2468_v59  ;;  %v2460_v9 = vunpack.i.l.bf16 %v3113_v2 }
 0x10b   : > { %2238 = vmatpush3.bf16.msra.mxu0 %v1546_v4  ;;  %v2455_v28 = vunpack.i.l.bf16 %v3100_v60  ;;  %v1543_v32 = vpack.c.bf16 %v2556_v17, %v2551_v3  ;;  %v2463_v53 = vunpack.i.h.bf16 %v3113_v2  ;;  %v2458_v24 = vunpack.i.h.bf16 %v3100_v60 }
 0x10c   : > { %2302 = vmatpush3.bf16.msra.mxu1 %v1562_v44  ;;  %642 = vperm.xlu1 %2624, %v3035_v40   ;;  %v1559_v8 = vpack.c.bf16 %v2559_v23, %v2554_v11  ;;  %v3261_v22 = vrot.slane %v437_v20, %v2937_v5  ;;  %v3264_v34 = vrot.slane %v437_v20, %v2949_v12  ;;  %v2445_v2 = vunpack.i.l.bf16 %v3080_v48 }
 0x10d   : > { %2239 = vmatprep.subr.bf16.mxu0 %v1553_v36  ;;  %2303 = vmatprep.subr.bf16.mxu1 %v1569_v19  ;;  %v1550_v14 = vpack.c.bf16 %v2460_v9, %v2455_v28  ;;  %v1566_v60 = vpack.c.bf16 %v2463_v53, %v2458_v24  ;;  %v2450_v39 = vunpack.i.l.bf16 %v3089_v52  ;;  %v2453_v10 = vunpack.i.h.bf16 %v3089_v52  ;;  %v2213_v9 = vld [vmem:[%s2880_s15 + $0x1] ss:$4 sm:$0xf]  ;;  %v2214_v28 = vld [vmem:[%s2880_s15 + $0x2] ss:$4 sm:$0xf] }
 0x10e   : > { %877 = vperm.xlu0 %2634, %v3107_v61   ;;  %v2448_v25 = vunpack.i.h.bf16 %v3080_v48  ;;  %v3315_v18 = vrot.slane %v437_v20, %v2940_v6  ;;  %v3318_v56 = vrot.slane %v437_v20, %v2960_v15 }
 0x10f   : > { %2240 = vmatpush3.bf16.msra.mxu0 %v1545_v47  ;;  %v1549_v52 = vpack.c.bf16 %v2450_v39, %v2445_v2  ;;  %v3403_v2 = vrot.slane %v2213_v9, %v2937_v5 }
 0x110   : > { %2304 = vmatpush3.bf16.msra.mxu1 %v1561_v38  ;;  %2241 = vmatprep.subr.bf16.mxu0 %v1552_v54  ;;  %v1565_v44 = vpack.c.bf16 %v2453_v10, %v2448_v25 }
 0x111   : > { %2305 = vmatprep.subr.bf16.mxu1 %v1568_v58  ;;  %2625 = vset.pattern.permute.xlu1 %v4264_v26 }
 0x112   : > { %2638 = vset.pattern.permute.xlu0 %v4265_v50  ;;  %857 = vperm.xlu1 %2625, %v3035_v40   ;;  %v1041_v40 = vld [vmem:[%s4167_s2 + $0x40] sm:$0xff] }
 0x113   : > { %1126 = vperm.xlu0 %2638, %v1048_v21   ;;  %2242 = vmatpush3.bf16.msra.mxu0 %v1544_v33 }
 0x114   : > { %2306 = vmatpush3.bf16.msra.mxu1 %v1560_v46  ;;  %2243 = vmatprep.subr.bf16.mxu0 %v1551_v42 }
 0x115   : > { %2307 = vmatprep.subr.bf16.mxu1 %v1567_v1 }
 0x116   : > { %2626 = vset.pattern.permute.xlu1 %v4265_v50 }
 0x117   : > { %1091 = vperm.xlu1 %2626, %v1041_v40   ;;  %2244 = vmatpush3.bf16.msra.mxu0 %v1543_v32  ;;  %v1045_v40 = vld [vmem:[%s4167_s2 + $0x60] sm:$0xff] }
 0x118   : > { %2308 = vmatpush3.bf16.msra.mxu1 %v1559_v8  ;;  %2245 = vmatprep.subr.bf16.mxu0 %v1550_v14  ;;  %v3397_v8 = vrot.slane %v2213_v9, %v2940_v6  ;;  %v3400_v14 = vrot.slane %v2214_v28, %v2940_v6 }
 0x119   : > { %v3271_v30 = vpop.permute.xlu1 %450  ;;  %2309 = vmatprep.subr.bf16.mxu1 %v1566_v60  ;;  %v3406_v60 = vrot.slane %v2214_v28, %v2937_v5  ;;  %v4293_v5 = vld [vmem:[#allocation20_spill] sm:$0xff] }
 0x11a   : > { %v3275_v45 = vmul.f32 %v3264_v34, %v3271_v30  ;;  %v3279_v4 = vmul.f32 %v3261_v22, %v3271_v30 }
 0x11b   : > { %2627 = vset.pattern.permute.xlu1 %v4266_v35  ;;  %2246 = vmatpush3.bf16.msra.mxu0 %v3127_v27 }
 0x11c   : > { %2310 = vmatpush3.bf16.msra.mxu1 %v3129_v29  ;;  %646 = vperm.xlu1 %2627, %v3086_v49  }
 0x11d   : > { %v3285_v48 = vpop.permute.xlu1 %455  ;;  %2247 = vmatprep.subr.bf16.mxu0 %v1549_v52  ;;  %2311 = vmatprep.subr.bf16.mxu1 %v1565_v44  ;;  %v4291_v44 = vld [vmem:[#allocation19_spill] sm:$0xff] }
 0x11f   : > { %2248 = vmatpush3.bf16.msra.mxu0 %v3109_v62 }
 0x120   : > { %650 = vperm.xlu1 %2627, %v3042_v41   ;;  %2312 = vmatpush3.bf16.msra.mxu1 %v3111_v63 }
 0x121   : > { %v3289_v36 = vpop.permute.xlu1 %465 }
 0x122   : > { %v3294_v27 = vmul.f32 %v3264_v34, %v3289_v36  ;;  %v3298_v29 = vmul.f32 %v3261_v22, %v3289_v36 }
 0x124   : > { %2629 = vset.pattern.permute.xlu1 %v4264_v26 }
 0x125   : > { %v3301_v49 = vpop.permute.xlu1 %475  ;;  %865 = vperm.xlu1 %2629, %v3042_v41   ;;  %v3312_v0 = vpop.permute.xlu0 %606  ;;  %v1043_v41 = vld [vmem:[%s4167_s2 + $0x50] sm:$0xff] }
 0x126   : > { %v3306_v62 = vmul.f32 %v3264_v34, %v3301_v49  ;;  %v3310_v63 = vmul.f32 %v3261_v22, %v3301_v49 }
 0x128   : > { %4267 = vst [vmem:[#allocation32_spill] sm:$0xff] %v3306_v62  ;;  %4268 = vst [vmem:[#allocation33_spill] sm:$0xff] %v3310_v63 }
 0x129   : > { %v486_v19 = vpop.permute.xlu1 %485  ;;  %2630 = vset.pattern.permute.xlu1 %v4265_v50 }
 0x12a   : > { %v3325_v7 = vmul.f32 %v3264_v34, %v486_v19  ;;  %v3328_v31 = vmul.f32 %v3261_v22, %v486_v19  ;;  %v3331_v13 = vmul.f32 %v3318_v56, %v486_v19  ;;  %v3334_v16 = vmul.f32 %v3315_v18, %v486_v19  ;;  %1101 = vperm.xlu1 %2630, %v1043_v41   ;;  %v3336_v47 = vpop.permute.xlu0 %440  ;;  %v4292_v41 = vld [vmem:[#allocation21_spill] sm:$0xff] }
 0x12b   : > { %v3423_v19 = vmul.f32 %v4292_v41, %v4291_v44 }
 0x12c   : > { %4269 = vst [vmem:[#allocation34_spill] sm:$0xff] %v3325_v7  ;;  %4270 = vst [vmem:[#allocation35_spill] sm:$0xff] %v3328_v31 }
 0x12d   : > { %4271 = vst [vmem:[#allocation36_spill] sm:$0xff] %v3331_v13  ;;  %4272 = vst [vmem:[#allocation37_spill] sm:$0xff] %v3334_v16  ;;  %v496_v38 = vpop.permute.xlu1 %495  ;;  %v3483_v16 = vmul.f32 %v3315_v18, %v3285_v48 }
 0x12e   : > { %v3339_v54 = vmul.f32 %v3264_v34, %v496_v38  ;;  %v3342_v58 = vmul.f32 %v3261_v22, %v496_v38  ;;  %v3345_v51 = vmul.f32 %v3318_v56, %v496_v38  ;;  %v3348_v57 = vmul.f32 %v3315_v18, %v496_v38  ;;  %2631 = vset.pattern.permute.xlu1 %v4266_v35  ;;  %v446_v37 = vpop.permute.xlu0 %445 }
 0x12f   : > { %654 = vperm.xlu1 %2631, %v3095_v55   ;;  %v3427_v38 = vmul.f32 %v4292_v41, %v4293_v5  ;;  %v546_v13 = vmul.f32 %v3315_v18, %v446_v37  ;;  %v539_v41 = vmul.f32 %v3264_v34, %v3336_v47 }
 0x130   : > { %4273 = vst [vmem:[#allocation38_spill] sm:$0xff] %v3339_v54  ;;  %4274 = vst [vmem:[#allocation39_spill] sm:$0xff] %v3342_v58  ;;  %v3479_v54 = vmul.f32 %v3318_v56, %v3285_v48 }
 0x131   : > { %4275 = vst [vmem:[#allocation40_spill] sm:$0xff] %v3345_v51  ;;  %4276 = vst [vmem:[#allocation41_spill] sm:$0xff] %v3348_v57  ;;  %v506_v59 = vpop.permute.xlu1 %505 }
 0x132   : > { %v3353_v3 = vmul.f32 %v3264_v34, %v506_v59  ;;  %v3356_v17 = vmul.f32 %v3261_v22, %v506_v59  ;;  %v3359_v33 = vmul.f32 %v3318_v56, %v506_v59  ;;  %v3362_v46 = vmul.f32 %v3315_v18, %v506_v59  ;;  %v3365_v21 = vpop.permute.xlu0 %460  ;;  %4294 = vst [vmem:[#allocation19_spill] sm:$0xff] %v3427_v38 }
 0x133   : > { %658 = vperm.xlu1 %2631, %v3053_v43   ;;  %v3430_v59 = vrot.slane %v2213_v9, %v2960_v15 }
 0x134   : > { %4277 = vst [vmem:[#allocation42_spill] sm:$0xff] %v3353_v3  ;;  %4278 = vst [vmem:[#allocation43_spill] sm:$0xff] %v3356_v17  ;;  %v3451_v3 = vmul.f32 %v3318_v56, %v3271_v30 }
 0x135   : > { %4279 = vst [vmem:[#allocation44_spill] sm:$0xff] %v3359_v33  ;;  %4280 = vst [vmem:[#allocation45_spill] sm:$0xff] %v3362_v46  ;;  %v516_v55 = vpop.permute.xlu1 %515  ;;  %v4297_v46 = vld [vmem:[#allocation24_spill] sm:$0xff] }
 0x136   : > { %v3368_v11 = vmul.f32 %v3264_v34, %v516_v55  ;;  %v3371_v23 = vmul.f32 %v3261_v22, %v516_v55  ;;  %v3374_v20 = vmul.f32 %v3318_v56, %v516_v55  ;;  %v3377_v42 = vmul.f32 %v3315_v18, %v516_v55  ;;  %v3380_v1 = vpop.permute.xlu0 %470 }
 0x137   : > { %2632 = vset.pattern.permute.xlu1 %v4264_v26  ;;  %v3386_v32 = vmul.f32 %v3264_v34, %v3380_v1  ;;  %v3390_v53 = vmul.f32 %v3261_v22, %v3380_v1  ;;  %v3433_v55 = vrot.slane %v2214_v28, %v2960_v15 }
 0x138   : > { %4281 = vst [vmem:[#allocation46_spill] sm:$0xff] %v3368_v11  ;;  %4282 = vst [vmem:[#allocation47_spill] sm:$0xff] %v3371_v23  ;;  %873 = vperm.xlu1 %2632, %v3053_v43   ;;  %v4296_v23 = vld [vmem:[#allocation25_spill] sm:$0xff] }
 0x139   : > { %4283 = vst [vmem:[#allocation48_spill] sm:$0xff] %v3374_v20  ;;  %4284 = vst [vmem:[#allocation49_spill] sm:$0xff] %v3377_v42  ;;  %v3439_v42 = vrot.slane %v2214_v28, %v2949_v12  ;;  %v4295_v20 = vld [vmem:[#allocation23_spill] sm:$0xff]  ;;  %v3447_v33 = vmul.f32 %v4296_v23, %v4297_v46  ;;  %v3459_v28 = vmul.f32 %v3264_v34, %v3285_v48 }
 0x13a   : > { %4285 = vst [vmem:[#allocation50_spill] sm:$0xff] %v3386_v32  ;;  %4286 = vst [vmem:[#allocation51_spill] sm:$0xff] %v3390_v53  ;;  %v611_v24 = vpop.permute.xlu1 %610  ;;  %v481_v39 = vpop.permute.xlu0 %480  ;;  %v3443_v11 = vmul.f32 %v4296_v23, %v4295_v20 }
 0x13b   : > { %v3409_v43 = vmul.f32 %v3264_v34, %v481_v39  ;;  %v3412_v10 = vmul.f32 %v3261_v22, %v481_v39  ;;  %v3415_v25 = vmul.f32 %v3318_v56, %v481_v39  ;;  %v3418_v52 = vmul.f32 %v3315_v18, %v481_v39  ;;  %4298 = vst [vmem:[#allocation23_spill] sm:$0xff] %v3447_v33 }
 0x13c   : > { %2633 = vset.pattern.permute.xlu1 %v4265_v50  ;;  %v3436_v39 = vrot.slane %v2213_v9, %v2949_v12  ;;  %v3455_v9 = vmul.f32 %v3315_v18, %v3271_v30  ;;  %v695_v31 = vmul.f32 %v3403_v2, %v611_v24  ;;  %v696_v7 = vmul.f32 %v3430_v59, %v611_v24 }
 0x13d   : > { %4287 = vst [vmem:[#allocation52_spill] sm:$0xff] %v3409_v43  ;;  %4288 = vst [vmem:[#allocation53_spill] sm:$0xff] %v3412_v10  ;;  %1111 = vperm.xlu1 %2633, %v1045_v40   ;;  %v3463_v40 = vmul.f32 %v3261_v22, %v3285_v48 }
 0x13e   : > { %4289 = vst [vmem:[#allocation54_spill] sm:$0xff] %v3415_v25  ;;  %4290 = vst [vmem:[#allocation55_spill] sm:$0xff] %v3418_v52  ;;  %v491_v12 = vpop.permute.xlu0 %490  ;;  %v694_v48 = vmul.f32 %v3436_v39, %v611_v24  ;;  %v690_v43 = vmul.f32 %v3436_v39, %v3312_v0 }
 0x13f   : > { %v826_v17 = vpop.permute.xlu1 %825  ;;  %v3466_v57 = vmul.f32 %v3264_v34, %v491_v12  ;;  %v3469_v51 = vmul.f32 %v3261_v22, %v491_v12  ;;  %v3472_v58 = vmul.f32 %v3318_v56, %v491_v12  ;;  %v3475_v30 = vmul.f32 %v3315_v18, %v491_v12 }
 0x140   : > { %v543_v12 = vmul.f32 %v3264_v34, %v446_v37  ;;  %v910_v23 = vmul.f32 %v3406_v60, %v826_v17 }
 0x141   : > { %4299 = vst [vmem:[#allocation56_spill] sm:$0xff] %v3466_v57  ;;  %4300 = vst [vmem:[#allocation57_spill] sm:$0xff] %v3469_v51  ;;  %v3487_v57 = vmul.f32 %v3318_v56, %v3289_v36  ;;  %v3491_v51 = vmul.f32 %v3315_v18, %v3289_v36  ;;  %2635 = vset.pattern.permute.xlu1 %v4266_v35  ;;  %v697_v36 = vmul.f32 %v3397_v8, %v611_v24 }
 0x142   : > { %4301 = vst [vmem:[#allocation58_spill] sm:$0xff] %v3472_v58  ;;  %4302 = vst [vmem:[#allocation59_spill] sm:$0xff] %v3475_v30  ;;  %v544_v30 = vmul.f32 %v3261_v22, %v446_v37  ;;  %v545_v58 = vmul.f32 %v3318_v56, %v446_v37  ;;  %662 = vperm.xlu1 %2635, %v3107_v61   ;;  %v501_v52 = vpop.permute.xlu0 %500  ;;  %v692_v24 = vmul.f32 %v3430_v59, %v3312_v0 }
 0x143   : > { %4303 = vst [vmem:[#allocation60_spill] sm:$0xff] %v3487_v57  ;;  %4304 = vst [vmem:[#allocation61_spill] sm:$0xff] %v3491_v51  ;;  %v3506_v25 = vmul.f32 %v3264_v34, %v501_v52  ;;  %v3509_v10 = vmul.f32 %v3261_v22, %v501_v52  ;;  %v3512_v37 = vmul.f32 %v3318_v56, %v501_v52 }
 0x144   : > { %v3503_v35 = vpop.permute.xlu1 %1051  ;;  %v3515_v61 = vmul.f32 %v3315_v18, %v501_v52  ;;  %v912_v52 = vmul.f32 %v3400_v14, %v826_v17  ;;  %v758_v5 = vadd.f32 %v694_v48, %v543_v12  ;;  %v760_v46 = vadd.f32 %v696_v7, %v545_v58 }
 0x145   : > { %4305 = vst [vmem:[#allocation62_spill] sm:$0xff] %v3506_v25  ;;  %4306 = vst [vmem:[#allocation63_spill] sm:$0xff] %v3509_v10  ;;  %v541_v25 = vmul.f32 %v3318_v56, %v3336_v47  ;;  %v909_v10 = vmul.f32 %v3439_v42, %v826_v17  ;;  %v759_v33 = vadd.f32 %v695_v31, %v544_v30 }
 0x146   : > { %4307 = vst [vmem:[#allocation64_spill] sm:$0xff] %v3512_v37  ;;  %4308 = vst [vmem:[#allocation65_spill] sm:$0xff] %v3515_v61  ;;  %v911_v37 = vmul.f32 %v3433_v55, %v826_v17  ;;  %v4309_v61 = vld [vmem:[#allocation31_spill] sm:$0xff]  ;;  %v511_v38 = vpop.permute.xlu0 %510  ;;  %v761_v63 = vadd.f32 %v697_v36, %v546_v13  ;;  %v3546_v7 = vmul.f32 %v3318_v56, %v3301_v49 }
 0x147   : > { %666 = vperm.xlu1 %2635, %v4309_v61   ;;  %v3531_v62 = vmul.f32 %v3264_v34, %v511_v38  ;;  %v3534_v53 = vmul.f32 %v3261_v22, %v511_v38  ;;  %v3537_v32 = vmul.f32 %v3318_v56, %v511_v38  ;;  %v3540_v57 = vmul.f32 %v3315_v18, %v511_v38 }
 0x148   : > { %4314 = vst [vmem:[#allocation69_spill] sm:$0xff] %v3546_v7  ;;  %v3550_v31 = vmul.f32 %v3315_v18, %v3301_v49  ;;  %v691_v13 = vmul.f32 %v3403_v2, %v3312_v0  ;;  %v693_v58 = vmul.f32 %v3397_v8, %v3312_v0  ;;  %v973_v38 = vadd.f32 %v909_v10, %v758_v5 }
 0x149   : > { %4310 = vst [vmem:[#allocation31_spill] sm:$0xff] %v3531_v62  ;;  %4311 = vst [vmem:[#allocation66_spill] sm:$0xff] %v3534_v53  ;;  %v3542_v17 = vpop.permute.xlu1 %614  ;;  %v975_v30 = vadd.f32 %v911_v37, %v760_v46  ;;  %v974_v12 = vadd.f32 %v910_v23, %v759_v33  ;;  %v976_v48 = vadd.f32 %v912_v52, %v761_v63  ;;  %v4321_v62 = vld [vmem:[#allocation26_spill] sm:$0xff] }
 0x14a   : > { %4312 = vst [vmem:[#allocation67_spill] sm:$0xff] %v3537_v32  ;;  %4313 = vst [vmem:[#allocation68_spill] sm:$0xff] %v3540_v57  ;;  %v540_v36 = vmul.f32 %v3261_v22, %v3336_v47  ;;  %v542_v57 = vmul.f32 %v3315_v18, %v3336_v47  ;;  %v3561_v49 = vadd.f32 %v690_v43, %v539_v41  ;;  %v1057_v53 = vpop.permute.xlu0 %1056 }
 0x14b   : > { %4315 = vst [vmem:[#allocation70_spill] sm:$0xff] %v3550_v31  ;;  %2636 = vset.pattern.permute.xlu1 %v4264_v26  ;;  %v3563_v32 = vadd.f32 %v692_v24, %v541_v25  ;;  %v3566_v0 = vadd.f32 %v1057_v53, %v973_v38  ;;  %v3568_v26 = vadd.f32 %v1057_v53, %v975_v30  ;;  %v1047_v25 = vld [vmem:[%s4167_s2 + $0x70] sm:$0xff]  ;;  %v4322_v31 = vld [vmem:[#allocation22_spill] sm:$0xff] }
 0x14c   : > { %881 = vperm.xlu1 %2636, %v4309_v61   ;;  %v3570_v33 = vadd.f32 %v1057_v53, %v974_v12  ;;  %v3572_v63 = vadd.f32 %v1057_v53, %v976_v48  ;;  %v3587_v61 = vmul.f32 %v3264_v34, %v3365_v21  ;;  %v3591_v24 = vmul.f32 %v3261_v22, %v3365_v21 }
 0x14d   : > { %4316 = vst [vmem:[#allocation71_spill] sm:$0xff] %v3566_v0  ;;  %4317 = vst [vmem:[#allocation72_spill] sm:$0xff] %v3568_v26  ;;  %v619_v46 = vpop.permute.xlu1 %618  ;;  %v4221_v53 = vmax.f32 %v3566_v0, 0.0  ;;  %v4223_v37 = vmax.f32 %v3568_v26, 0.0  ;;  %v3594_v38 = vadd.f32 %v691_v13, %v540_v36  ;;  %v3596_v30 = vadd.f32 %v693_v58, %v542_v57  ;;  %v4324_v26 = vld [vmem:[#allocation30_spill] sm:$0xff] }
 0x14e   : > { %v702_v23 = vmul.f32 %v3436_v39, %v619_v46  ;;  %v703_v47 = vmul.f32 %v3403_v2, %v619_v46  ;;  %v704_v43 = vmul.f32 %v3430_v59, %v619_v46  ;;  %v705_v10 = vmul.f32 %v3397_v8, %v619_v46  ;;  %v1067_v52 = vpop.permute.xlu0 %1066 }
 0x14f   : > { %v4224_v41 = vmax.f32 %v3570_v33, 0.0  ;;  %v4222_v5 = vmax.f32 %v3572_v63, 0.0  ;;  %v3600_v12 = vmul.f32 %v3318_v56, %v3365_v21  ;;  %v3604_v48 = vmul.f32 %v3315_v18, %v3365_v21  ;;  %1261 = vst [vmem:[%s2891_s6 + $0x20] sm:$0xff] %v4221_v53  ;;  %1263 = vst [vmem:[%s2891_s6 + $0x30] sm:$0xff] %v4223_v37  ;;  %v4319_v37 = vld [vmem:[#allocation16_spill] sm:$0xff] }
 0x150   : > { %2637 = vset.pattern.permute.xlu1 %v4265_v50  ;;  %v698_v34 = vmul.f32 %v3436_v39, %v3542_v17  ;;  %v699_v22 = vmul.f32 %v3403_v2, %v3542_v17  ;;  %v766_v50 = vadd.f32 %v702_v23, %v3459_v28  ;;  %v767_v57 = vadd.f32 %v703_v47, %v3463_v40 }
 0x151   : > { %1121 = vperm.xlu1 %2637, %v1047_v25   ;;  %1262 = vst [vmem:[%s2891_s6 + $0x28] sm:$0xff] %v4224_v41  ;;  %1264 = vst [vmem:[%s2891_s6 + $0x38] sm:$0xff] %v4222_v5  ;;  %v768_v21 = vadd.f32 %v704_v43, %v3479_v54  ;;  %v769_v13 = vadd.f32 %v705_v10, %v3483_v16  ;;  %v1817_v28 = vrot.slane %v4319_v37, %v2960_v15  ;;  %v4320_v54 = vld [vmem:[#allocation29_spill] sm:$0xff] }
 0x152   : > { %v834_v58 = vpop.permute.xlu1 %833  ;;  %v3630_v5 = vpop.permute.xlu0 %1076  ;;  %v1821_v40 = vrot.slane %v4319_v37, %v2940_v6  ;;  %v1834_v16 = vadd.f32 %v3423_v19, %v3443_v11  ;;  %v1830_v23 = vmul.f32 %v4320_v54, %v4295_v20 }
 0x153   : > { %v917_v36 = vmul.f32 %v3439_v42, %v834_v58  ;;  %v918_v46 = vmul.f32 %v3406_v60, %v834_v58  ;;  %v919_v25 = vmul.f32 %v3433_v55, %v834_v58  ;;  %v920_v53 = vmul.f32 %v3400_v14, %v834_v58  ;;  %4318 = vst [vmem:[#allocation73_spill] sm:$0xff] %v3630_v5  ;;  %v4323_v5 = vld [vmem:[#allocation27_spill] sm:$0xff] }
 0x154   : > { %v1828_v58 = vmul.f32 %v4321_v62, %v1817_v28  ;;  %v1829_v7 = vmul.f32 %v4322_v31, %v1821_v40  ;;  %v1831_v51 = vmul.f32 %v4323_v5, %v4291_v44  ;;  %v1832_v0 = vmul.f32 %v4324_v26, %v1817_v28 }
 0x155   : > { %v981_v47 = vadd.f32 %v917_v36, %v766_v50  ;;  %v982_v43 = vadd.f32 %v918_v46, %v767_v57  ;;  %v983_v10 = vadd.f32 %v919_v25, %v768_v21  ;;  %v984_v41 = vadd.f32 %v920_v53, %v769_v13 }
 0x156   : > { %v700_v53 = vmul.f32 %v3430_v59, %v3542_v17  ;;  %v701_v44 = vmul.f32 %v3397_v8, %v3542_v17  ;;  %v1835_v50 = vadd.f32 %v1834_v16, %v1828_v58  ;;  %v1839_v57 = vadd.f32 %v1831_v51, %v1830_v23 }
 0x157   : > { %v3645_v37 = vpop.permute.xlu1 %1061  ;;  %v3647_v6 = vadd.f32 %v1067_v52, %v982_v43  ;;  %v3649_v11 = vadd.f32 %v1067_v52, %v984_v41  ;;  %v3651_v20 = vadd.f32 %v1067_v52, %v981_v47  ;;  %v3653_v19 = vadd.f32 %v1067_v52, %v983_v10  ;;  %v822_v21 = vpop.permute.xlu0 %821 }
 0x158   : > { %v3665_v46 = vmul.f32 %v3318_v56, %v3380_v1  ;;  %v3669_v17 = vmul.f32 %v3315_v18, %v3380_v1  ;;  %v762_v25 = vadd.f32 %v698_v34, %v3275_v45  ;;  %v763_v51 = vadd.f32 %v699_v22, %v3279_v4 }
 0x159   : > { %v4232_v41 = vmax.f32 %v3647_v6, 0.0  ;;  %v4231_v13 = vmax.f32 %v3649_v11, 0.0  ;;  %v4230_v52 = vmax.f32 %v3651_v20, 0.0  ;;  %v4229_v36 = vmax.f32 %v3653_v19, 0.0 }
 0x15a   : > { %v905_v28 = vmul.f32 %v3439_v42, %v822_v21  ;;  %v907_v16 = vmul.f32 %v3433_v55, %v822_v21  ;;  %v3687_v18 = vadd.f32 %v1835_v50, %v1829_v7  ;;  %v3689_v45 = vadd.f32 %v1839_v57, %v1832_v0  ;;  %v4325_v50 = vld [vmem:[#allocation28_spill] sm:$0xff] }
 0x15b   : > { %1270 = vst [vmem:[%s2891_s6 + $0x68] sm:$0xff] %v4232_v41  ;;  %1272 = vst [vmem:[%s2891_s6 + $0x78] sm:$0xff] %v4231_v13  ;;  %v764_v4 = vadd.f32 %v700_v53, %v3451_v3  ;;  %v765_v56 = vadd.f32 %v701_v44, %v3455_v9  ;;  %v906_v1 = vmul.f32 %v3406_v60, %v822_v21  ;;  %v830_v23 = vpop.permute.xlu0 %829 }
 0x15c   : > { %1269 = vst [vmem:[%s2891_s6 + $0x60] sm:$0xff] %v4230_v52  ;;  %1271 = vst [vmem:[%s2891_s6 + $0x70] sm:$0xff] %v4229_v36  ;;  %v908_v34 = vmul.f32 %v3400_v14, %v822_v21  ;;  %v623_v22 = vpop.permute.xlu1 %622  ;;  %v913_v0 = vmul.f32 %v3439_v42, %v830_v23  ;;  %v914_v3 = vmul.f32 %v3406_v60, %v830_v23  ;;  %v4326_v21 = vld [vmem:[#allocation17_spill] sm:$0xff] }
 0x15d   : > { %v706_v47 = vmul.f32 %v3436_v39, %v623_v22  ;;  %v707_v43 = vmul.f32 %v3403_v2, %v623_v22  ;;  %v708_v10 = vmul.f32 %v3430_v59, %v623_v22  ;;  %v709_v7 = vmul.f32 %v3397_v8, %v623_v22 }
 0x15e   : > { %v915_v9 = vmul.f32 %v3433_v55, %v830_v23  ;;  %v916_v58 = vmul.f32 %v3400_v14, %v830_v23  ;;  %v969_v53 = vadd.f32 %v905_v28, %v3561_v49  ;;  %v971_v44 = vadd.f32 %v907_v16, %v3563_v32 }
 0x15f   : > { %v3706_v57 = vmul.f32 %v4325_v50, %v1821_v40  ;;  %v3710_v36 = vrot.slane %v4326_v21, %v2960_v15  ;;  %v770_v22 = vadd.f32 %v706_v47, %v3587_v61  ;;  %v771_v52 = vadd.f32 %v707_v43, %v3591_v24  ;;  %v838_v28 = vpop.permute.xlu0 %837 }
 0x160   : > { %v627_v13 = vpop.permute.xlu1 %626  ;;  %v970_v41 = vadd.f32 %v906_v1, %v3594_v38  ;;  %v972_v23 = vadd.f32 %v908_v34, %v3596_v30  ;;  %v978_v26 = vadd.f32 %v914_v3, %v763_v51  ;;  %v980_v49 = vadd.f32 %v916_v58, %v765_v56 }
 0x161   : > { %v3717_v32 = vadd.f32 %v708_v10, %v3600_v12  ;;  %v773_v40 = vadd.f32 %v709_v7, %v3604_v48  ;;  %v977_v16 = vadd.f32 %v913_v0, %v762_v25  ;;  %v979_v15 = vadd.f32 %v915_v9, %v764_v4 }
 0x162   : > { %v710_v50 = vmul.f32 %v3436_v39, %v627_v13  ;;  %v711_v61 = vmul.f32 %v3403_v2, %v627_v13  ;;  %v921_v24 = vmul.f32 %v3439_v42, %v838_v28  ;;  %v922_v38 = vmul.f32 %v3406_v60, %v838_v28 }
 0x163   : > { %v712_v30 = vmul.f32 %v3430_v59, %v627_v13  ;;  %v713_v51 = vmul.f32 %v3397_v8, %v627_v13  ;;  %v1130_v12 = vadd.f32 %v3503_v35, %v970_v41  ;;  %v1132_v56 = vadd.f32 %v3503_v35, %v972_v23  ;;  %v4329_v23 = vld [vmem:[#allocation71_spill] sm:$0xff] }
 0x164   : > { %v1129_v48 = vadd.f32 %v3503_v35, %v969_v53  ;;  %v1131_v25 = vadd.f32 %v3503_v35, %v971_v44  ;;  %v923_v4 = vmul.f32 %v3433_v55, %v838_v28  ;;  %v924_v1 = vmul.f32 %v3400_v14, %v838_v28 }
 0x165   : > { %v842_v34 = vpop.permute.xlu1 %841  ;;  %v1138_v47 = vadd.f32 %v3645_v37, %v978_v26  ;;  %v1140_v13 = vadd.f32 %v3645_v37, %v980_v49  ;;  %v1194_v41 = vmax.f32 %v1130_v12, 0.0  ;;  %v1196_v43 = vmax.f32 %v1132_v56, 0.0  ;;  %v4333_v12 = vld [vmem:[#allocation61_spill] sm:$0xff] }
 0x166   : > { %v1193_v10 = vmax.f32 %v1129_v48, 0.0  ;;  %v1195_v7 = vmax.f32 %v1131_v25, 0.0  ;;  %v774_v0 = vadd.f32 %v710_v50, %v3294_v27  ;;  %v775_v35 = vadd.f32 %v711_v61, %v3298_v29  ;;  %v4331_v27 = vld [vmem:[#allocation72_spill] sm:$0xff]  ;;  %v3750_v61 = vpop.permute.xlu0 %845 }
 0x167   : > { %v926_v3 = vmul.f32 %v3406_v60, %v842_v34  ;;  %v928_v9 = vmul.f32 %v3400_v14, %v842_v34  ;;  %1258 = vst [vmem:[%s2891_s6 + $0x8] sm:$0xff] %v1194_v41  ;;  %v4327_v58 = vmax.f32 %v3570_v33, 0.0  ;;  %1260 = vst [vmem:[%s2891_s6 + $0x18] sm:$0xff] %v1196_v43  ;;  %v4328_v26 = vmax.f32 %v3572_v63, 0.0 }
 0x168   : > { %1257 = vst [vmem:[%s2891_s6] sm:$0xff] %v1193_v10  ;;  %v4330_v49 = vmax.f32 %v4329_v23, 0.0  ;;  %1259 = vst [vmem:[%s2891_s6 + $0x10] sm:$0xff] %v1195_v7  ;;  %v4332_v50 = vmax.f32 %v4331_v27, 0.0  ;;  %v777_v56 = vadd.f32 %v713_v51, %v4333_v12  ;;  %v925_v48 = vmul.f32 %v3439_v42, %v842_v34 }
 0x169   : > { %v1382_v53 = vpack.c.bf16 %v4327_v58, %v1194_v41  ;;  %v1384_v44 = vpack.c.bf16 %v4328_v26, %v1196_v43  ;;  %v985_v33 = vadd.f32 %v921_v24, %v770_v22  ;;  %v986_v25 = vadd.f32 %v922_v38, %v771_v52 }
 0x16a   : > { %v1381_v28 = vpack.c.bf16 %v4330_v49, %v1193_v10  ;;  %v1383_v29 = vpack.c.bf16 %v4332_v50, %v1195_v7  ;;  %v990_v63 = vadd.f32 %v926_v3, %v775_v35  ;;  %v1202_v41 = vmax.f32 %v1138_v47, 0.0  ;;  %v1072_v10 = vpop.permute.xlu1 %1071 }
 0x16b   : > { %1605 = vmatprep.mubr.bf16.mxu0 %v1382_v53  ;;  %1702 = vmatprep.mubr.bf16.mxu1 %v1384_v44  ;;  %v1204_v43 = vmax.f32 %v1140_v13, 0.0  ;;  %v988_v58 = vadd.f32 %v924_v1, %v773_v40  ;;  %v992_v7 = vadd.f32 %v928_v9, %v777_v56  ;;  %v1146_v26 = vadd.f32 %v1072_v10, %v986_v25  ;;  %v4336_v13 = vld [vmem:[#allocation60_spill] sm:$0xff]  ;;  %v3766_v44 = vpop.permute.xlu0 %853 }
 0x16c   : > { %1606 = vmatmul.mubr.bf16.vlgmr.msra.gmra.mxu0 %v1381_v28  ;;  %1703 = vmatmul.mubr.bf16.vlgmr.msra.gmra.mxu1 %v1383_v29  ;;  %v1137_v23 = vadd.f32 %v3645_v37, %v977_v16  ;;  %v927_v51 = vmul.f32 %v3433_v55, %v842_v34  ;;  %1266 = vst [vmem:[%s2891_s6 + $0x48] sm:$0xff] %v1202_v41  ;;  %v4334_v22 = vmax.f32 %v3647_v6, 0.0  ;;  %v4335_v24 = vmax.f32 %v3649_v11, 0.0  ;;  %v4337_v34 = vld [vmem:[#allocation73_spill] sm:$0xff] }
 0x16d   : > { %1268 = vst [vmem:[%s2891_s6 + $0x58] sm:$0xff] %v1204_v43  ;;  %v1148_v47 = vadd.f32 %v1072_v10, %v988_v58  ;;  %v776_v40 = vadd.f32 %v712_v30, %v4336_v13  ;;  %v989_v1 = vadd.f32 %v925_v48, %v774_v0  ;;  %v1139_v3 = vadd.f32 %v3645_v37, %v979_v15 }
 0x16e   : > { %v1386_v52 = vpack.c.bf16 %v4334_v22, %v1202_v41  ;;  %v1388_v38 = vpack.c.bf16 %v4335_v24, %v1204_v43  ;;  %v1201_v35 = vmax.f32 %v1137_v23, 0.0  ;;  %v987_v16 = vadd.f32 %v923_v4, %v3717_v32  ;;  %v4339_v4 = vld [vmem:[#allocation15_spill] sm:$0xff] }
 0x16f   : > { %v1145_v6 = vadd.f32 %v1072_v10, %v985_v33  ;;  %v1150_v9 = vadd.f32 %v4337_v34, %v990_v63  ;;  %v1210_v53 = vmax.f32 %v1146_v26, 0.0  ;;  %v4338_v11 = vmax.f32 %v3651_v20, 0.0  ;;  %v631_v49 = vpop.permute.xlu1 %630  ;;  %v3793_v22 = vpop.permute.xlu0 %861 }
 0x170   : > { %1613 = vmatprep.mubr.bf16.mxu0 %v1386_v52  ;;  %1710 = vmatprep.mubr.bf16.mxu1 %v1388_v38  ;;  %1265 = vst [vmem:[%s2891_s6 + $0x40] sm:$0xff] %v1201_v35  ;;  %v1203_v0 = vmax.f32 %v1139_v3, 0.0  ;;  %v1152_v37 = vadd.f32 %v4337_v34, %v992_v7  ;;  %v1212_v15 = vmax.f32 %v1148_v47, 0.0  ;;  %v991_v28 = vadd.f32 %v927_v51, %v776_v40  ;;  %v4341_v47 = vld [vmem:[#allocation50_spill] sm:$0xff]  ;;  %v4342_v40 = vld [vmem:[#allocation51_spill] sm:$0xff] }
 0x171   : > { %v1385_v30 = vpack.c.bf16 %v4338_v11, %v1201_v35  ;;  %v1147_v27 = vadd.f32 %v1072_v10, %v987_v16  ;;  %v929_v32 = vmul.f32 %v3439_v42, %v3750_v61  ;;  %1274 = vst [vmem:[%s2891_s6 + $0x88] sm:$0xff] %v1210_v53  ;;  %v3777_v50 = vrot.slane %v4326_v21, %v4339_v4  ;;  %v4343_v11 = vld [vmem:[#allocation32_spill] sm:$0xff]  ;;  %v4346_v4 = vld [vmem:[#allocation70_spill] sm:$0xff] }
 0x172   : > { %1267 = vst [vmem:[%s2891_s6 + $0x50] sm:$0xff] %v1203_v0  ;;  %v4340_v20 = vmax.f32 %v3653_v19, 0.0  ;;  %v1214_v12 = vmax.f32 %v1150_v9, 0.0  ;;  %v1216_v56 = vmax.f32 %v1152_v37, 0.0  ;;  %1276 = vst [vmem:[%s2891_s6 + $0x98] sm:$0xff] %v1212_v15  ;;  %v1149_v48 = vadd.f32 %v4337_v34, %v989_v1  ;;  %v4345_v37 = vld [vmem:[#allocation69_spill] sm:$0xff] }
 0x173   : > { %v714_v33 = vmul.f32 %v3436_v39, %v631_v49  ;;  %v715_v25 = vmul.f32 %v3403_v2, %v631_v49  ;;  %v716_v63 = vmul.f32 %v3430_v59, %v631_v49  ;;  %v717_v41 = vmul.f32 %v3397_v8, %v631_v49  ;;  %v635_v58 = vpop.permute.xlu1 %634 }
 0x174   : > { %v1387_v29 = vpack.c.bf16 %v4340_v20, %v1203_v0  ;;  %1614 = vmatmul.mubr.bf16.gmra.mxu0 %v1385_v30  ;;  %1278 = vst [vmem:[%s2891_s6 + $0xa8] sm:$0xff] %v1214_v12  ;;  %v1390_v19 = vpack.c.bf16 %v1214_v12, %v1210_v53  ;;  %1280 = vst [vmem:[%s2891_s6 + $0xb8] sm:$0xff] %v1216_v56  ;;  %v1392_v21 = vpack.c.bf16 %v1216_v56, %v1212_v15  ;;  %v4344_v0 = vld [vmem:[#allocation33_spill] sm:$0xff] }
 0x175   : > { %v1209_v43 = vmax.f32 %v1145_v6, 0.0  ;;  %v1213_v10 = vmax.f32 %v1149_v48, 0.0  ;;  %v1151_v7 = vadd.f32 %v4337_v34, %v991_v28  ;;  %v1211_v26 = vmax.f32 %v1147_v27, 0.0  ;;  %1837 = vadd.xlane.f32.xlu1 %v3687_v18 }
 0x176   : > { %1711 = vmatmul.mubr.bf16.gmra.mxu1 %v1387_v29  ;;  %v718_v23 = vmul.f32 %v3436_v39, %v635_v58  ;;  %v719_v51 = vmul.f32 %v3403_v2, %v635_v58  ;;  %v930_v52 = vmul.f32 %v3406_v60, %v3750_v61  ;;  %1621 = vmatprep.mubr.bf16.mxu0 %v1390_v19 }
 0x177   : > { %1718 = vmatprep.mubr.bf16.mxu1 %v1392_v21  ;;  %1273 = vst [vmem:[%s2891_s6 + $0x80] sm:$0xff] %v1209_v43  ;;  %1277 = vst [vmem:[%s2891_s6 + $0xa0] sm:$0xff] %v1213_v10  ;;  %v1389_v24 = vpack.c.bf16 %v1213_v10, %v1209_v43  ;;  %v720_v38 = vmul.f32 %v3430_v59, %v635_v58  ;;  %v778_v13 = vadd.f32 %v714_v33, %v4341_v47  ;;  %v4350_v47 = vld [vmem:[#allocation20_spill] sm:$0xff] }
 0x178   : > { %v779_v1 = vadd.f32 %v715_v25, %v4342_v40  ;;  %v1215_v35 = vmax.f32 %v1151_v7, 0.0  ;;  %1275 = vst [vmem:[%s2891_s6 + $0x90] sm:$0xff] %v1211_v26  ;;  %v721_v3 = vmul.f32 %v3397_v8, %v635_v58  ;;  %v780_v16 = vadd.f32 %v716_v63, %v3665_v46  ;;  %v850_v28 = vpop.permute.xlu1 %849 }
 0x179   : > { %v781_v6 = vadd.f32 %v717_v41, %v3669_v17  ;;  %v931_v34 = vmul.f32 %v3433_v55, %v3750_v61  ;;  %v932_v9 = vmul.f32 %v3400_v14, %v3750_v61  ;;  %v782_v30 = vadd.f32 %v718_v23, %v4343_v11  ;;  %v1087_v61 = vpop.permute.xlu0 %1086  ;;  %v4347_v23 = vld [vmem:[#allocation23_spill] sm:$0xff] }
 0x17a   : > { %1279 = vst [vmem:[%s2891_s6 + $0xb0] sm:$0xff] %v1215_v35  ;;  %v1391_v53 = vpack.c.bf16 %v1215_v35, %v1211_v26  ;;  %v783_v49 = vadd.f32 %v719_v51, %v4344_v0  ;;  %v784_v15 = vadd.f32 %v720_v38, %v4345_v37  ;;  %v933_v18 = vmul.f32 %v3439_v42, %v850_v28  ;;  %v4348_v51 = vld [vmem:[#allocation19_spill] sm:$0xff]  ;;  %v4351_v0 = vld [vmem:[#allocation30_spill] sm:$0xff] }
 0x17b   : > { %v934_v46 = vmul.f32 %v3406_v60, %v850_v28  ;;  %v935_v17 = vmul.f32 %v3433_v55, %v850_v28  ;;  %v936_v27 = vmul.f32 %v3400_v14, %v850_v28  ;;  %v785_v20 = vadd.f32 %v721_v3, %v4346_v4  ;;  %v4352_v4 = vld [vmem:[#allocation28_spill] sm:$0xff] }
 0x17c   : > { %v993_v29 = vadd.f32 %v929_v32, %v778_v13  ;;  %v994_v12 = vadd.f32 %v930_v52, %v779_v1  ;;  %v1890_v56 = vmul.f32 %v4321_v62, %v3710_v36  ;;  %1622 = vmatmul.mubr.bf16.gmra.mxu0 %v1389_v24  ;;  %v997_v48 = vadd.f32 %v933_v18, %v782_v30  ;;  %v4349_v24 = vld [vmem:[#allocation24_spill] sm:$0xff] }
 0x17d   : > { %v998_v33 = vadd.f32 %v934_v46, %v783_v49  ;;  %v999_v25 = vadd.f32 %v935_v17, %v784_v15  ;;  %v1000_v63 = vadd.f32 %v936_v27, %v785_v20  ;;  %v995_v41 = vadd.f32 %v931_v34, %v780_v16 }
 0x17e   : > { %1719 = vmatmul.mubr.bf16.gmra.mxu1 %v1391_v53  ;;  %v996_v19 = vadd.f32 %v932_v9, %v781_v6  ;;  %v1841_v21 = vadd.f32 %v3689_v45, %v3706_v57  ;;  %v1157_v43 = vadd.f32 %v1087_v61, %v997_v48  ;;  %v1891_v32 = vmul.f32 %v4322_v31, %v3777_v50  ;;  %v1082_v26 = vpop.permute.xlu1 %1081 }
 0x17f   : > { %v1158_v10 = vadd.f32 %v1087_v61, %v998_v33  ;;  %v1159_v58 = vadd.f32 %v1087_v61, %v999_v25  ;;  %v1160_v7 = vadd.f32 %v1087_v61, %v1000_v63  ;;  %v1896_v52 = vadd.f32 %v4348_v51, %v4347_v23  ;;  %v4356_v51 = vld [vmem:[#allocation53_spill] sm:$0xff] }
 0x180   : > { %1842 = vadd.xlane.f32.xlu0 %v1841_v21  ;;  %v1892_v38 = vmul.f32 %v4320_v54, %v4349_v24  ;;  %v1893_v45 = vmul.f32 %v4323_v5, %v4350_v47  ;;  %v1153_v57 = vadd.f32 %v1082_v26, %v993_v29  ;;  %v1154_v13 = vadd.f32 %v1082_v26, %v994_v12  ;;  %v4353_v29 = vld [vmem:[#allocation25_spill] sm:$0xff]  ;;  %v4357_v24 = vld [vmem:[#allocation54_spill] sm:$0xff]  ;;  %v4358_v47 = vld [vmem:[#allocation55_spill] sm:$0xff] }
 0x181   : > { %v1155_v40 = vadd.f32 %v1082_v26, %v995_v41  ;;  %v1156_v1 = vadd.f32 %v1082_v26, %v996_v19  ;;  %v1222_v35 = vmax.f32 %v1158_v10, 0.0  ;;  %v1224_v3 = vmax.f32 %v1160_v7, 0.0  ;;  %v4354_v12 = vld [vmem:[#allocation21_spill] sm:$0xff]  ;;  %v4355_v26 = vld [vmem:[#allocation52_spill] sm:$0xff] }
 0x182   : > { %v1221_v16 = vmax.f32 %v1157_v43, 0.0  ;;  %v1223_v6 = vmax.f32 %v1159_v58, 0.0  ;;  %v1218_v34 = vmax.f32 %v1154_v13, 0.0  ;;  %v1217_v53 = vmax.f32 %v1153_v57, 0.0 }
 0x183   : > { %v1220_v9 = vmax.f32 %v1156_v1, 0.0  ;;  %v1219_v11 = vmax.f32 %v1155_v40, 0.0  ;;  %1286 = vst [vmem:[%s2891_s6 + $0xe8] sm:$0xff] %v1222_v35  ;;  %1288 = vst [vmem:[%s2891_s6 + $0xf8] sm:$0xff] %v1224_v3  ;;  %v1897_v30 = vadd.f32 %v1896_v52, %v1890_v56  ;;  %v1894_v49 = vmul.f32 %v4351_v0, %v3710_v36  ;;  %v639_v17 = vpop.permute.xlu1 %638  ;;  %v4359_v40 = vld [vmem:[#allocation34_spill] sm:$0xff] }
 0x184   : > { %1285 = vst [vmem:[%s2891_s6 + $0xe0] sm:$0xff] %v1221_v16  ;;  %1287 = vst [vmem:[%s2891_s6 + $0xf0] sm:$0xff] %v1223_v6  ;;  %v1901_v37 = vadd.f32 %v1893_v45, %v1892_v38  ;;  %v1394_v15 = vpack.c.bf16 %v1222_v35, %v1218_v34  ;;  %v1393_v18 = vpack.c.bf16 %v1221_v16, %v1217_v53  ;;  %v4360_v35 = vld [vmem:[#allocation35_spill] sm:$0xff]  ;;  %v4361_v16 = vld [vmem:[#allocation36_spill] sm:$0xff] }
 0x185   : > { %1282 = vst [vmem:[%s2891_s6 + $0xc8] sm:$0xff] %v1218_v34  ;;  %1284 = vst [vmem:[%s2891_s6 + $0xd8] sm:$0xff] %v1220_v9  ;;  %v1396_v28 = vpack.c.bf16 %v1224_v3, %v1220_v9  ;;  %v1395_v46 = vpack.c.bf16 %v1223_v6, %v1219_v11  ;;  %v1898_v27 = vadd.f32 %v1897_v30, %v1891_v32  ;;  %v4362_v34 = vld [vmem:[#allocation37_spill] sm:$0xff] }
 0x186   : > { %1281 = vst [vmem:[%s2891_s6 + $0xc0] sm:$0xff] %v1217_v53  ;;  %1283 = vst [vmem:[%s2891_s6 + $0xd0] sm:$0xff] %v1219_v11  ;;  %v1895_v20 = vmul.f32 %v4352_v4, %v3777_v50  ;;  %v1902_v61 = vadd.f32 %v1901_v37, %v1894_v49  ;;  %1629 = vmatprep.mubr.bf16.mxu0 %v1394_v15  ;;  %v1921_v56 = vadd.f32 %v4354_v12, %v4353_v29 }
 0x187   : > { %v1926_v36 = vadd.f32 %v4323_v5, %v4320_v54  ;;  %1726 = vmatprep.mubr.bf16.mxu1 %v1396_v28  ;;  %1630 = vmatmul.mubr.bf16.gmra.mxu0 %v1393_v18  ;;  %v722_v48 = vmul.f32 %v3436_v39, %v639_v17  ;;  %v723_v33 = vmul.f32 %v3403_v2, %v639_v17  ;;  %v643_v25 = vpop.permute.xlu1 %642 }
 0x188   : > { %1727 = vmatmul.mubr.bf16.gmra.mxu1 %v1395_v46  ;;  %1899 = vadd.xlane.f32.xlu1 %v1898_v27  ;;  %v1903_v63 = vadd.f32 %v1902_v61, %v1895_v20  ;;  %v724_v50 = vmul.f32 %v3430_v59, %v639_v17  ;;  %v725_v41 = vmul.f32 %v3397_v8, %v639_v17 }
 0x189   : > { %v1922_v19 = vadd.f32 %v4321_v62, %v1921_v56  ;;  %v1927_v21 = vadd.f32 %v4351_v0, %v1926_v36  ;;  %v726_v5 = vmul.f32 %v3436_v39, %v643_v25  ;;  %v727_v54 = vmul.f32 %v3403_v2, %v643_v25 }
 0x18a   : > { %v728_v43 = vmul.f32 %v3430_v59, %v643_v25  ;;  %v729_v10 = vmul.f32 %v3397_v8, %v643_v25  ;;  %1904 = vadd.xlane.f32.xlu0 %v1903_v63  ;;  %v937_v58 = vmul.f32 %v3439_v42, %v3766_v44  ;;  %v938_v32 = vmul.f32 %v3406_v60, %v3766_v44 }
 0x18b   : > { %v939_v62 = vmul.f32 %v3433_v55, %v3766_v44  ;;  %v940_v7 = vmul.f32 %v3400_v14, %v3766_v44  ;;  %v786_v23 = vadd.f32 %v722_v48, %v4355_v26  ;;  %v787_v52 = vadd.f32 %v723_v33, %v4356_v51 }
 0x18c   : > { %v788_v38 = vadd.f32 %v724_v50, %v4357_v24  ;;  %v789_v45 = vadd.f32 %v725_v41, %v4358_v47  ;;  %v1923_v57 = vadd.f32 %v4322_v31, %v1922_v19  ;;  %v1928_v13 = vadd.f32 %v4352_v4, %v1927_v21  ;;  %v1097_v31 = vpop.permute.xlu0 %1096 }
 0x18d   : > { %v790_v1 = vadd.f32 %v726_v5, %v4359_v40  ;;  %v791_v3 = vadd.f32 %v727_v54, %v4360_v35  ;;  %v792_v6 = vadd.f32 %v728_v43, %v4361_v16  ;;  %v793_v44 = vadd.f32 %v729_v10, %v4362_v34  ;;  %v858_v9 = vpop.permute.xlu1 %857  ;;  %v4364_v40 = vld [vmem:[#allocation57_spill] sm:$0xff]  ;;  %v4365_v35 = vld [vmem:[#allocation58_spill] sm:$0xff]  ;;  %v4366_v16 = vld [vmem:[#allocation59_spill] sm:$0xff] }
 0x18e   : > { %v941_v53 = vmul.f32 %v3439_v42, %v858_v9  ;;  %v942_v11 = vmul.f32 %v3406_v60, %v858_v9  ;;  %v943_v30 = vmul.f32 %v3433_v55, %v858_v9  ;;  %v944_v0 = vmul.f32 %v3400_v14, %v858_v9  ;;  %1924 = vadd.xlane.f32.xlu1 %v1923_v57  ;;  %v4363_v57 = vld [vmem:[#allocation56_spill] sm:$0xff]  ;;  %v4367_v34 = vld [vmem:[#allocation38_spill] sm:$0xff]  ;;  %v4368_v9 = vld [vmem:[#allocation39_spill] sm:$0xff] }
 0x18f   : > { %1929 = vadd.xlane.f32.xlu0 %v1928_v13  ;;  %v1001_v18 = vadd.f32 %v937_v58, %v786_v23  ;;  %v1002_v46 = vadd.f32 %v938_v32, %v787_v52  ;;  %v1003_v17 = vadd.f32 %v939_v62, %v788_v38  ;;  %v1004_v27 = vadd.f32 %v940_v7, %v789_v45 }
 0x190   : > { %v1005_v49 = vadd.f32 %v941_v53, %v790_v1  ;;  %v1006_v37 = vadd.f32 %v942_v11, %v791_v3  ;;  %v1007_v15 = vadd.f32 %v943_v30, %v792_v6  ;;  %v1008_v28 = vadd.f32 %v944_v0, %v793_v44  ;;  %v4369_v11 = vld [vmem:[#allocation40_spill] sm:$0xff]  ;;  %v4370_v0 = vld [vmem:[#allocation41_spill] sm:$0xff] }
 0x192   : > { %v1165_v4 = vadd.f32 %v1097_v31, %v1005_v49  ;;  %v1166_v20 = vadd.f32 %v1097_v31, %v1006_v37  ;;  %v1167_v61 = vadd.f32 %v1097_v31, %v1007_v15  ;;  %v1168_v29 = vadd.f32 %v1097_v31, %v1008_v28  ;;  %v1092_v12 = vpop.permute.xlu1 %1091 }
 0x193   : > { %v1161_v56 = vadd.f32 %v1092_v12, %v1001_v18  ;;  %v1162_v36 = vadd.f32 %v1092_v12, %v1002_v46  ;;  %v1163_v48 = vadd.f32 %v1092_v12, %v1003_v17  ;;  %v1164_v33 = vadd.f32 %v1092_v12, %v1004_v27 }
 0x194   : > { %v1230_v25 = vmax.f32 %v1166_v20, 0.0  ;;  %v1232_v63 = vmax.f32 %v1168_v29, 0.0  ;;  %v1229_v50 = vmax.f32 %v1165_v4, 0.0  ;;  %v1231_v41 = vmax.f32 %v1167_v61, 0.0  ;;  %v1107_v20 = vpop.permute.xlu0 %1106 }
 0x195   : > { %v1226_v19 = vmax.f32 %v1162_v36, 0.0  ;;  %v1228_v21 = vmax.f32 %v1164_v33, 0.0  ;;  %v1225_v5 = vmax.f32 %v1161_v56, 0.0  ;;  %v1227_v54 = vmax.f32 %v1163_v48, 0.0 }
 0x196   : > { %1294 = vst [vmem:[%s2891_s6 + $0x128] sm:$0xff] %v1230_v25  ;;  %1296 = vst [vmem:[%s2891_s6 + $0x138] sm:$0xff] %v1232_v63  ;;  %v945_v46 = vmul.f32 %v3439_v42, %v3793_v22  ;;  %v946_v17 = vmul.f32 %v3406_v60, %v3793_v22  ;;  %v947_v27 = vmul.f32 %v3433_v55, %v3793_v22 }
 0x197   : > { %1293 = vst [vmem:[%s2891_s6 + $0x120] sm:$0xff] %v1229_v50  ;;  %1295 = vst [vmem:[%s2891_s6 + $0x130] sm:$0xff] %v1231_v41  ;;  %v647_v43 = vpop.permute.xlu1 %646  ;;  %v1398_v10 = vpack.c.bf16 %v1230_v25, %v1226_v19  ;;  %v1400_v58 = vpack.c.bf16 %v1232_v63, %v1228_v21  ;;  %v1397_v32 = vpack.c.bf16 %v1229_v50, %v1225_v5 }
 0x198   : > { %1290 = vst [vmem:[%s2891_s6 + $0x108] sm:$0xff] %v1226_v19  ;;  %1292 = vst [vmem:[%s2891_s6 + $0x118] sm:$0xff] %v1228_v21  ;;  %v1399_v62 = vpack.c.bf16 %v1231_v41, %v1227_v54  ;;  %v730_v7 = vmul.f32 %v3436_v39, %v647_v43  ;;  %v731_v26 = vmul.f32 %v3403_v2, %v647_v43 }
 0x199   : > { %1289 = vst [vmem:[%s2891_s6 + $0x100] sm:$0xff] %v1225_v5  ;;  %1291 = vst [vmem:[%s2891_s6 + $0x110] sm:$0xff] %v1227_v54  ;;  %1637 = vmatprep.mubr.bf16.mxu0 %v1398_v10  ;;  %1734 = vmatprep.mubr.bf16.mxu1 %v1400_v58  ;;  %v732_v23 = vmul.f32 %v3430_v59, %v647_v43  ;;  %v733_v51 = vmul.f32 %v3397_v8, %v647_v43 }
 0x19a   : > { %1638 = vmatmul.mubr.bf16.gmra.mxu0 %v1397_v32  ;;  %1735 = vmatmul.mubr.bf16.gmra.mxu1 %v1399_v62  ;;  %v794_v13 = vadd.f32 %v730_v7, %v4363_v57  ;;  %v795_v1 = vadd.f32 %v731_v26, %v4364_v40  ;;  %v948_v4 = vmul.f32 %v3400_v14, %v3793_v22  ;;  %v1117_v7 = vpop.permute.xlu0 %1116 }
 0x19b   : > { %v651_v52 = vpop.permute.xlu1 %650  ;;  %v796_v3 = vadd.f32 %v732_v23, %v4365_v35  ;;  %v797_v6 = vadd.f32 %v733_v51, %v4366_v16 }
 0x19c   : > { %v734_v24 = vmul.f32 %v3436_v39, %v651_v52  ;;  %v735_v38 = vmul.f32 %v3403_v2, %v651_v52  ;;  %v736_v47 = vmul.f32 %v3430_v59, %v651_v52  ;;  %v737_v45 = vmul.f32 %v3397_v8, %v651_v52 }
 0x19d   : > { %v1009_v36 = vadd.f32 %v945_v46, %v794_v13  ;;  %v1010_v48 = vadd.f32 %v946_v17, %v795_v1  ;;  %v1011_v33 = vadd.f32 %v947_v27, %v796_v3  ;;  %v1012_v25 = vadd.f32 %v948_v4, %v797_v6  ;;  %v4374_v46 = vld [vmem:[#allocation65_spill] sm:$0xff]  ;;  %v4375_v27 = vld [vmem:[#allocation42_spill] sm:$0xff] }
 0x19e   : > { %v798_v44 = vadd.f32 %v734_v24, %v4367_v34  ;;  %v799_v53 = vadd.f32 %v735_v38, %v4368_v9  ;;  %v800_v30 = vadd.f32 %v736_v47, %v4369_v11  ;;  %v801_v31 = vadd.f32 %v737_v45, %v4370_v0  ;;  %v870_v3 = vpop.permute.xlu0 %869 }
 0x19f   : > { %v954_v11 = vmul.f32 %v3406_v60, %v870_v3  ;;  %v956_v0 = vmul.f32 %v3400_v14, %v870_v3 }
 0x1a0   : > { %v866_v49 = vpop.permute.xlu1 %865 }
 0x1a1   : > { %v949_v37 = vmul.f32 %v3439_v42, %v866_v49  ;;  %v950_v15 = vmul.f32 %v3406_v60, %v866_v49  ;;  %v951_v28 = vmul.f32 %v3433_v55, %v866_v49  ;;  %v952_v18 = vmul.f32 %v3400_v14, %v866_v49 }
 0x1a3   : > { %v1013_v61 = vadd.f32 %v949_v37, %v798_v44  ;;  %v1014_v29 = vadd.f32 %v950_v15, %v799_v53  ;;  %v1015_v12 = vadd.f32 %v951_v28, %v800_v30  ;;  %v1016_v56 = vadd.f32 %v952_v18, %v801_v31  ;;  %v4371_v31 = vld [vmem:[#allocation62_spill] sm:$0xff]  ;;  %v4372_v37 = vld [vmem:[#allocation63_spill] sm:$0xff]  ;;  %v4373_v28 = vld [vmem:[#allocation64_spill] sm:$0xff] }
 0x1a4   : > { %v953_v53 = vmul.f32 %v3439_v42, %v870_v3  ;;  %v955_v30 = vmul.f32 %v3433_v55, %v870_v3 }
 0x1a5   : > { %v1173_v63 = vadd.f32 %v1107_v20, %v1013_v61  ;;  %v1174_v50 = vadd.f32 %v1107_v20, %v1014_v29  ;;  %v1175_v41 = vadd.f32 %v1107_v20, %v1015_v12  ;;  %v1176_v19 = vadd.f32 %v1107_v20, %v1016_v56  ;;  %v1102_v21 = vpop.permute.xlu1 %1101  ;;  %v4376_v20 = vld [vmem:[#allocation43_spill] sm:$0xff]  ;;  %v4377_v29 = vld [vmem:[#allocation44_spill] sm:$0xff]  ;;  %v4378_v56 = vld [vmem:[#allocation45_spill] sm:$0xff] }
 0x1a6   : > { %v1169_v5 = vadd.f32 %v1102_v21, %v1009_v36  ;;  %v1170_v22 = vadd.f32 %v1102_v21, %v1010_v48  ;;  %v1171_v54 = vadd.f32 %v1102_v21, %v1011_v33  ;;  %v1172_v43 = vadd.f32 %v1102_v21, %v1012_v25 }
 0x1a7   : > { %v1238_v10 = vmax.f32 %v1174_v50, 0.0  ;;  %v1240_v58 = vmax.f32 %v1176_v19, 0.0  ;;  %v1237_v32 = vmax.f32 %v1173_v63, 0.0  ;;  %v1239_v62 = vmax.f32 %v1175_v41, 0.0 }
 0x1a8   : > { %v1234_v26 = vmax.f32 %v1170_v22, 0.0  ;;  %v1236_v23 = vmax.f32 %v1172_v43, 0.0  ;;  %v1233_v51 = vmax.f32 %v1169_v5, 0.0  ;;  %v1235_v52 = vmax.f32 %v1171_v54, 0.0 }
 0x1a9   : > { %1302 = vst [vmem:[%s2891_s6 + $0x168] sm:$0xff] %v1238_v10  ;;  %1304 = vst [vmem:[%s2891_s6 + $0x178] sm:$0xff] %v1240_v58 }
 0x1aa   : > { %1301 = vst [vmem:[%s2891_s6 + $0x160] sm:$0xff] %v1237_v32  ;;  %1303 = vst [vmem:[%s2891_s6 + $0x170] sm:$0xff] %v1239_v62  ;;  %v655_v24 = vpop.permute.xlu1 %654  ;;  %v1402_v38 = vpack.c.bf16 %v1238_v10, %v1234_v26  ;;  %v1404_v47 = vpack.c.bf16 %v1240_v58, %v1236_v23  ;;  %v1401_v45 = vpack.c.bf16 %v1237_v32, %v1233_v51 }
 0x1ab   : > { %1298 = vst [vmem:[%s2891_s6 + $0x148] sm:$0xff] %v1234_v26  ;;  %1300 = vst [vmem:[%s2891_s6 + $0x158] sm:$0xff] %v1236_v23  ;;  %v1403_v57 = vpack.c.bf16 %v1239_v62, %v1235_v52  ;;  %v738_v13 = vmul.f32 %v3436_v39, %v655_v24  ;;  %v739_v40 = vmul.f32 %v3403_v2, %v655_v24 }
 0x1ac   : > { %1297 = vst [vmem:[%s2891_s6 + $0x140] sm:$0xff] %v1233_v51  ;;  %1299 = vst [vmem:[%s2891_s6 + $0x150] sm:$0xff] %v1235_v52  ;;  %1645 = vmatprep.mubr.bf16.mxu0 %v1402_v38  ;;  %1742 = vmatprep.mubr.bf16.mxu1 %v1404_v47  ;;  %v740_v1 = vmul.f32 %v3430_v59, %v655_v24  ;;  %v741_v35 = vmul.f32 %v3397_v8, %v655_v24 }
 0x1ad   : > { %1646 = vmatmul.mubr.bf16.gmra.mxu0 %v1401_v45  ;;  %1743 = vmatmul.mubr.bf16.gmra.mxu1 %v1403_v57  ;;  %v802_v49 = vadd.f32 %v738_v13, %v4371_v31  ;;  %v803_v15 = vadd.f32 %v739_v40, %v4372_v37 }
 0x1ae   : > { %v659_v16 = vpop.permute.xlu1 %658  ;;  %v804_v18 = vadd.f32 %v740_v1, %v4373_v28  ;;  %v805_v17 = vadd.f32 %v741_v35, %v4374_v46 }
 0x1af   : > { %v742_v6 = vmul.f32 %v3436_v39, %v659_v16  ;;  %v743_v34 = vmul.f32 %v3403_v2, %v659_v16  ;;  %v744_v44 = vmul.f32 %v3430_v59, %v659_v16  ;;  %v745_v9 = vmul.f32 %v3397_v8, %v659_v16 }
 0x1b0   : > { %v1017_v22 = vadd.f32 %v953_v53, %v802_v49  ;;  %v1018_v54 = vadd.f32 %v954_v11, %v803_v15  ;;  %v1019_v43 = vadd.f32 %v955_v30, %v804_v18  ;;  %v1020_v10 = vadd.f32 %v956_v0, %v805_v17  ;;  %v878_v0 = vpop.permute.xlu0 %877 }
 0x1b1   : > { %v806_v4 = vadd.f32 %v742_v6, %v4375_v27  ;;  %v807_v61 = vadd.f32 %v743_v34, %v4376_v20  ;;  %v808_v12 = vadd.f32 %v744_v44, %v4377_v29  ;;  %v809_v36 = vadd.f32 %v745_v9, %v4378_v56  ;;  %v4382_v56 = vld [vmem:[#allocation68_spill] sm:$0xff] }
 0x1b2   : > { %v961_v18 = vmul.f32 %v3439_v42, %v878_v0  ;;  %v962_v46 = vmul.f32 %v3406_v60, %v878_v0  ;;  %v963_v17 = vmul.f32 %v3433_v55, %v878_v0  ;;  %v964_v27 = vmul.f32 %v3400_v14, %v878_v0  ;;  %v4388_v0 = vld [vmem:[#allocation14_spill] sm:$0xff] }
 0x1b3   : > { %v874_v48 = vpop.permute.xlu1 %873 }
 0x1b4   : > { %v957_v33 = vmul.f32 %v3439_v42, %v874_v48  ;;  %v958_v25 = vmul.f32 %v3406_v60, %v874_v48  ;;  %v959_v63 = vmul.f32 %v3433_v55, %v874_v48  ;;  %v960_v50 = vmul.f32 %v3400_v14, %v874_v48  ;;  %v4384_v48 = vld [vmem:[#allocation47_spill] sm:$0xff] }
 0x1b6   : > { %v1021_v41 = vadd.f32 %v957_v33, %v806_v4  ;;  %v1022_v19 = vadd.f32 %v958_v25, %v807_v61  ;;  %v1023_v21 = vadd.f32 %v959_v63, %v808_v12  ;;  %v1024_v5 = vadd.f32 %v960_v50, %v809_v36  ;;  %v4379_v4 = vld [vmem:[#allocation31_spill] sm:$0xff]  ;;  %v4380_v61 = vld [vmem:[#allocation66_spill] sm:$0xff]  ;;  %v4385_v33 = vld [vmem:[#allocation48_spill] sm:$0xff] }
 0x1b7   : > { %v4381_v12 = vld [vmem:[#allocation67_spill] sm:$0xff]  ;;  %v4383_v36 = vld [vmem:[#allocation46_spill] sm:$0xff]  ;;  %v4386_v63 = vld [vmem:[#allocation49_spill] sm:$0xff] }
 0x1b8   : > { %v1112_v58 = vpop.permute.xlu1 %1111  ;;  %v1182_v32 = vadd.f32 %v1117_v7, %v1022_v19  ;;  %v1184_v62 = vadd.f32 %v1117_v7, %v1024_v5  ;;  %v1181_v26 = vadd.f32 %v1117_v7, %v1021_v41  ;;  %v1183_v23 = vadd.f32 %v1117_v7, %v1023_v21 }
 0x1b9   : > { %v1177_v51 = vadd.f32 %v1112_v58, %v1017_v22  ;;  %v1178_v52 = vadd.f32 %v1112_v58, %v1018_v54  ;;  %v1179_v24 = vadd.f32 %v1112_v58, %v1019_v43  ;;  %v1180_v38 = vadd.f32 %v1112_v58, %v1020_v10  ;;  %v1127_v54 = vpop.permute.xlu0 %1126 }
 0x1ba   : > { %v1246_v47 = vmax.f32 %v1182_v32, 0.0  ;;  %v1248_v45 = vmax.f32 %v1184_v62, 0.0  ;;  %v1245_v57 = vmax.f32 %v1181_v26, 0.0  ;;  %v1247_v13 = vmax.f32 %v1183_v23, 0.0 }
 0x1bb   : > { %v1242_v40 = vmax.f32 %v1178_v52, 0.0  ;;  %v1244_v1 = vmax.f32 %v1180_v38, 0.0  ;;  %v1241_v35 = vmax.f32 %v1177_v51, 0.0  ;;  %v1243_v3 = vmax.f32 %v1179_v24, 0.0 }
 0x1bc   : > { %1310 = vst [vmem:[%s2891_s6 + $0x1a8] sm:$0xff] %v1246_v47  ;;  %1312 = vst [vmem:[%s2891_s6 + $0x1b8] sm:$0xff] %v1248_v45 }
 0x1bd   : > { %1309 = vst [vmem:[%s2891_s6 + $0x1a0] sm:$0xff] %v1245_v57  ;;  %1311 = vst [vmem:[%s2891_s6 + $0x1b0] sm:$0xff] %v1247_v13  ;;  %v663_v7 = vpop.permute.xlu1 %662  ;;  %v1406_v16 = vpack.c.bf16 %v1246_v47, %v1242_v40  ;;  %v1408_v6 = vpack.c.bf16 %v1248_v45, %v1244_v1  ;;  %v1405_v34 = vpack.c.bf16 %v1245_v57, %v1241_v35 }
 0x1be   : > { %1306 = vst [vmem:[%s2891_s6 + $0x188] sm:$0xff] %v1242_v40  ;;  %1308 = vst [vmem:[%s2891_s6 + $0x198] sm:$0xff] %v1244_v1  ;;  %v1407_v44 = vpack.c.bf16 %v1247_v13, %v1243_v3  ;;  %v746_v9 = vmul.f32 %v3436_v39, %v663_v7  ;;  %v747_v53 = vmul.f32 %v3403_v2, %v663_v7 }
 0x1bf   : > { %1305 = vst [vmem:[%s2891_s6 + $0x180] sm:$0xff] %v1241_v35  ;;  %1307 = vst [vmem:[%s2891_s6 + $0x190] sm:$0xff] %v1243_v3  ;;  %1653 = vmatprep.mubr.bf16.mxu0 %v1406_v16  ;;  %1750 = vmatprep.mubr.bf16.mxu1 %v1408_v6  ;;  %v748_v11 = vmul.f32 %v3430_v59, %v663_v7  ;;  %v749_v30 = vmul.f32 %v3397_v8, %v663_v7 }
 0x1c0   : > { %1654 = vmatmul.mubr.bf16.gmra.mxu0 %v1405_v34  ;;  %1751 = vmatmul.mubr.bf16.gmra.mxu1 %v1407_v44  ;;  %v810_v20 = vadd.f32 %v746_v9, %v4379_v4  ;;  %v811_v29 = vadd.f32 %v747_v53, %v4380_v61  ;;  %v4387_v53 = vlaneseq }
 0x1c2   : > { %v667_v31 = vpop.permute.xlu1 %666  ;;  %v1025_v62 = vadd.f32 %v961_v18, %v810_v20  ;;  %v1026_v26 = vadd.f32 %v962_v46, %v811_v29  ;;  %v1804_v18 = vld [vmem:[%s2889_s13] sm:$0x1]  ;;  %v1866_v29 = vld [vmem:[%s2889_s13 + $0x1] sm:$0x1] }
 0x1c3   : > { %v750_v49 = vmul.f32 %v3436_v39, %v667_v31  ;;  %v751_v37 = vmul.f32 %v3403_v2, %v667_v31  ;;  %v752_v15 = vmul.f32 %v3430_v59, %v667_v31  ;;  %v753_v28 = vmul.f32 %v3397_v8, %v667_v31 }
 0x1c4   : > { %v812_v39 = vadd.f32 %v748_v11, %v4381_v12  ;;  %v813_v2 = vadd.f32 %v749_v30, %v4382_v56  ;;  %v1847_v11 = vand.u32 127, %v4387_v53 }
 0x1c5   : > { %v814_v59 = vadd.f32 %v750_v49, %v4383_v36  ;;  %v815_v8 = vadd.f32 %v751_v37, %v4384_v48  ;;  %v816_v25 = vadd.f32 %v752_v15, %v4385_v33  ;;  %v817_v50 = vadd.f32 %v753_v28, %v4386_v63  ;;  %v1920_v48 = vld [vmem:[%s2889_s13 + $0x2] sm:$0x1] }
 0x1c6   : > { %v1027_v23 = vadd.f32 %v963_v17, %v812_v39  ;;  %v1028_v51 = vadd.f32 %v964_v27, %v813_v2  ;;  %v1850_v31 = vsub.s32 %v1847_v11, %v4388_v0  ;;  %v1852_v49 = vadd.s32 4294967288, %v1847_v11 }
 0x1c7   : > { %v882_v41 = vpop.permute.xlu1 %881 }
 0x1c8   : > { %v965_v19 = vmul.f32 %v3439_v42, %v882_v41  ;;  %v966_v21 = vmul.f32 %v3406_v60, %v882_v41  ;;  %v967_v5 = vmul.f32 %v3433_v55, %v882_v41  ;;  %v968_v22 = vmul.f32 %v3400_v14, %v882_v41 }
 0x1c9   : > { %v1855_v28 = vsub.s32 %v1852_v49, %v4388_v0  ;;  %v1369_v49 = vld [vmem:[%s2870_s12 + $0x20] sm:$0xff] }
 0x1ca   : > { %v1029_v43 = vadd.f32 %v965_v19, %v814_v59  ;;  %v1030_v10 = vadd.f32 %v966_v21, %v815_v8  ;;  %v1031_v58 = vadd.f32 %v967_v5, %v816_v25  ;;  %v1032_v32 = vadd.f32 %v968_v22, %v817_v50  ;;  %v1365_v22 = vld [vmem:[%s2870_s12] sm:$0xff] }
 0x1cc   : > { %v1189_v52 = vadd.f32 %v1127_v54, %v1029_v43  ;;  %v1190_v24 = vadd.f32 %v1127_v54, %v1030_v10  ;;  %v1191_v38 = vadd.f32 %v1127_v54, %v1031_v58  ;;  %v1192_v42 = vadd.f32 %v1127_v54, %v1032_v32  ;;  %v1122_v60 = vpop.permute.xlu1 %1121 }
 0x1cd   : > { %v1185_v55 = vadd.f32 %v1122_v60, %v1025_v62  ;;  %v1186_v14 = vadd.f32 %v1122_v60, %v1026_v26  ;;  %v1187_v47 = vadd.f32 %v1122_v60, %v1027_v23  ;;  %v1188_v45 = vadd.f32 %v1122_v60, %v1028_v51  ;;  %v1366_v51 = vld [vmem:[%s2870_s12 + $0x8] sm:$0xff] }
 0x1ce   : > { %v1254_v57 = vmax.f32 %v1190_v24, 0.0  ;;  %v1256_v13 = vmax.f32 %v1192_v42, 0.0  ;;  %v1253_v40 = vmax.f32 %v1189_v52, 0.0  ;;  %v1255_v1 = vmax.f32 %v1191_v38, 0.0 }
 0x1cf   : > { %v1250_v35 = vmax.f32 %v1186_v14, 0.0  ;;  %v1252_v3 = vmax.f32 %v1188_v45, 0.0  ;;  %v1249_v7 = vmax.f32 %v1185_v55, 0.0  ;;  %v1251_v16 = vmax.f32 %v1187_v47, 0.0  ;;  %v1367_v45 = vld [vmem:[%s2870_s12 + $0x10] sm:$0xff] }
 0x1d0   : > { %1318 = vst [vmem:[%s2891_s6 + $0x1e8] sm:$0xff] %v1254_v57  ;;  %1320 = vst [vmem:[%s2891_s6 + $0x1f8] sm:$0xff] %v1256_v13 }
 0x1d1   : > { %1317 = vst [vmem:[%s2891_s6 + $0x1e0] sm:$0xff] %v1253_v40  ;;  %1319 = vst [vmem:[%s2891_s6 + $0x1f0] sm:$0xff] %v1255_v1  ;;  %v1410_v6 = vpack.c.bf16 %v1254_v57, %v1250_v35  ;;  %v1412_v34 = vpack.c.bf16 %v1256_v13, %v1252_v3  ;;  %v1409_v44 = vpack.c.bf16 %v1253_v40, %v1249_v7 }
 0x1d2   : > { %1314 = vst [vmem:[%s2891_s6 + $0x1c8] sm:$0xff] %v1250_v35  ;;  %1316 = vst [vmem:[%s2891_s6 + $0x1d8] sm:$0xff] %v1252_v3  ;;  %v1411_v9 = vpack.c.bf16 %v1255_v1, %v1251_v16 }
 0x1d3   : > { %1313 = vst [vmem:[%s2891_s6 + $0x1c0] sm:$0xff] %v1249_v7  ;;  %1315 = vst [vmem:[%s2891_s6 + $0x1d0] sm:$0xff] %v1251_v16  ;;  %1661 = vmatprep.mubr.bf16.mxu0 %v1410_v6  ;;  %1758 = vmatprep.mubr.bf16.mxu1 %v1412_v34  ;;  %v1368_v6 = vld [vmem:[%s2870_s12 + $0x18] sm:$0xff] }
 0x1d4   : > { %1662 = vmatmul.mubr.bf16.gmra.mxu0 %v1409_v44  ;;  %1759 = vmatmul.mubr.bf16.gmra.mxu1 %v1411_v9 }
 0x1fe   : > { %v1838_v30 = vpop.xlane.xlu1 %1837 }
 0x1ff   : > { %v1851_v15 = vrot.slane %v1838_v30, %v1850_v31 }
 0x209   : > { %v1843_v37 = vpop.xlane.xlu0 %1842 }
 0x20a   : > { %v1856_v46 = vrot.slane %v1843_v37, %v1855_v28 }
 0x20c   : > { %v1858_v17 = vsel %vm1857_vm12, %v1856_v46, %v1851_v15 }
 0x20d   : > { %v1860_v27 = vadd.f32 %v1858_v17, %v1804_v18 }
 0x20f   : > { %1862 = vst.msk [vmem:[%s2889_s13] sm:$0x1] %vm1861_vm13, %v1860_v27 }
 0x211   : > { %v1900_v4 = vpop.xlane.xlu1 %1899 }
 0x212   : > { %v1911_v61 = vrot.slane %v1900_v4, %v1850_v31 }
 0x213   : > { %v1905_v20 = vpop.xlane.xlu0 %1904 }
 0x214   : > { %v1915_v12 = vrot.slane %v1905_v20, %v1855_v28  ;;  %v1370_v20 = vld [vmem:[%s2870_s12 + $0x28] sm:$0xff] }
 0x216   : > { %v1916_v39 = vsel %vm1857_vm12, %v1915_v12, %v1911_v61 }
 0x217   : > { %v1918_v56 = vadd.f32 %v1916_v39, %v1866_v29  ;;  %v1925_v2 = vpop.xlane.xlu1 %1924 }
 0x218   : > { %v1930_v36 = vpop.xlane.xlu0 %1929  ;;  %v1936_v59 = vrot.slane %v1925_v2, %v1850_v31 }
 0x219   : > { %v1940_v8 = vrot.slane %v1930_v36, %v1855_v28  ;;  %1919 = vst.msk [vmem:[%s2889_s13 + $0x1] sm:$0x1] %vm1861_vm13, %v1918_v56 }
 0x21b   : > { %v1941_v33 = vsel %vm1857_vm12, %v1940_v8, %v1936_v59  ;;  %v1371_v8 = vld [vmem:[%s2870_s12 + $0x30] sm:$0xff] }
 0x21c   : > { %v1943_v25 = vadd.f32 %v1941_v33, %v1920_v48 }
 0x21e   : > { %1944 = vst.msk [vmem:[%s2889_s13 + $0x2] sm:$0x1] %vm1861_vm13, %v1943_v25 }
 0x22c   : > { %v2249_v63 = vpop.f32.mrf.mxu0  ;;  %v2313_v50 = vpop.f32.mrf.mxu1 }
 0x22e   : > { %v2250_v41 = vpop.f32.mrf.mxu0  ;;  %v2314_v19 = vpop.f32.mrf.mxu1 }
 0x22f   : > { %v2251_v21 = vadd.f32 %v2250_v41, %v2249_v63  ;;  %v2315_v5 = vadd.f32 %v2314_v19, %v2313_v50 }
 0x230   : > { %v2252_v54 = vpop.f32.mrf.mxu0  ;;  %v2316_v43 = vpop.f32.mrf.mxu1 }
 0x231   : > { %v1705_v10 = vadd.f32 %v2315_v5, %v2251_v21  ;;  %v1372_v5 = vld [vmem:[%s2870_s12 + $0x38] sm:$0xff] }
 0x232   : > { %v2253_v58 = vpop.f32.mrf.mxu0  ;;  %v2317_v32 = vpop.f32.mrf.mxu1 }
 0x233   : > { %v1767_v62 = vadd.f32 %v1705_v10, %v1365_v22  ;;  %v2254_v26 = vadd.f32 %v2253_v58, %v2252_v54  ;;  %v2318_v23 = vadd.f32 %v2317_v32, %v2316_v43 }
 0x234   : > { %v2255_v52 = vpop.f32.mrf.mxu0 }
 0x235   : > { %1784 = vst.msk [vmem:[%s2870_s12] sm:$0xff] %vm1783_vm14, %v1767_v62  ;;  %v1708_v38 = vadd.f32 %v2318_v23, %v2254_v26 }
 0x236   : > { %v2319_v24 = vpop.f32.mrf.mxu1  ;;  %v2256_v42 = vpop.f32.mrf.mxu0 }
 0x237   : > { %v1768_v55 = vadd.f32 %v1708_v38, %v1366_v51  ;;  %v2257_v14 = vadd.f32 %v2256_v42, %v2255_v52  ;;  %v1373_v51 = vld [vmem:[%s2870_s12 + $0x40] sm:$0xff] }
 0x238   : > { %v2320_v60 = vpop.f32.mrf.mxu1  ;;  %v2258_v57 = vpop.f32.mrf.mxu0 }
 0x239   : > { %v2321_v47 = vadd.f32 %v2320_v60, %v2319_v24  ;;  %1785 = vst.msk [vmem:[%s2870_s12 + $0x8] sm:$0xff] %vm1783_vm14, %v1768_v55 }
 0x23a   : > { %v2322_v13 = vpop.f32.mrf.mxu1  ;;  %v2259_v1 = vpop.f32.mrf.mxu0 }
 0x23b   : > { %v1713_v40 = vadd.f32 %v2321_v47, %v2257_v14  ;;  %v2260_v7 = vadd.f32 %v2259_v1, %v2258_v57  ;;  %v1374_v47 = vld [vmem:[%s2870_s12 + $0x48] sm:$0xff] }
 0x23c   : > { %v2323_v35 = vpop.f32.mrf.mxu1  ;;  %v2261_v34 = vpop.f32.mrf.mxu0 }
 0x23d   : > { %v1769_v3 = vadd.f32 %v1713_v40, %v1367_v45  ;;  %v2324_v16 = vadd.f32 %v2323_v35, %v2322_v13 }
 0x23e   : > { %v2325_v44 = vpop.f32.mrf.mxu1  ;;  %v2262_v53 = vpop.f32.mrf.mxu0 }
 0x23f   : > { %1786 = vst.msk [vmem:[%s2870_s12 + $0x10] sm:$0xff] %vm1783_vm14, %v1769_v3  ;;  %v1716_v9 = vadd.f32 %v2324_v16, %v2260_v7  ;;  %v2263_v0 = vadd.f32 %v2262_v53, %v2261_v34 }
 0x240   : > { %v2326_v11 = vpop.f32.mrf.mxu1  ;;  %v2264_v37 = vpop.f32.mrf.mxu0 }
 0x241   : > { %v1770_v30 = vadd.f32 %v1716_v9, %v1368_v6  ;;  %v2327_v31 = vadd.f32 %v2326_v11, %v2325_v44  ;;  %v1375_v6 = vld [vmem:[%s2870_s12 + $0x50] sm:$0xff] }
 0x242   : > { %v2328_v15 = vpop.f32.mrf.mxu1  ;;  %v2265_v18 = vpop.f32.mrf.mxu0 }
 0x243   : > { %1787 = vst.msk [vmem:[%s2870_s12 + $0x18] sm:$0xff] %vm1783_vm14, %v1770_v30  ;;  %v1721_v28 = vadd.f32 %v2327_v31, %v2263_v0  ;;  %v2266_v27 = vadd.f32 %v2265_v18, %v2264_v37  ;;  %v1376_v31 = vld [vmem:[%s2870_s12 + $0x58] sm:$0xff] }
 0x244   : > { %v2329_v46 = vpop.f32.mrf.mxu1 }
 0x245   : > { %v1771_v17 = vadd.f32 %v1721_v28, %v1369_v49  ;;  %v2330_v4 = vadd.f32 %v2329_v46, %v2328_v15 }
 0x247   : > { %1788 = vst.msk [vmem:[%s2870_s12 + $0x20] sm:$0xff] %vm1783_vm14, %v1771_v17  ;;  %v1724_v61 = vadd.f32 %v2330_v4, %v2266_v27  ;;  %v2267_v12 = vpop.f32.mrf.mxu0 }
 0x248   : > { %v2331_v39 = vpop.f32.mrf.mxu1 }
 0x249   : > { %v1772_v29 = vadd.f32 %v1724_v61, %v1370_v20  ;;  %v2268_v56 = vpop.f32.mrf.mxu0  ;;  %v1377_v20 = vld [vmem:[%s2870_s12 + $0x60] sm:$0xff] }
 0x24a   : > { %v2269_v2 = vadd.f32 %v2268_v56, %v2267_v12  ;;  %v2332_v36 = vpop.f32.mrf.mxu1 }
 0x24b   : > { %1789 = vst.msk [vmem:[%s2870_s12 + $0x28] sm:$0xff] %vm1783_vm14, %v1772_v29  ;;  %v2333_v59 = vadd.f32 %v2332_v36, %v2331_v39  ;;  %v2270_v48 = vpop.f32.mrf.mxu0 }
 0x24c   : > { %v2334_v33 = vpop.f32.mrf.mxu1 }
 0x24d   : > { %v1729_v25 = vadd.f32 %v2333_v59, %v2269_v2  ;;  %v2271_v63 = vpop.f32.mrf.mxu0  ;;  %v1378_v59 = vld [vmem:[%s2870_s12 + $0x68] sm:$0xff] }
 0x24e   : > { %v2272_v50 = vadd.f32 %v2271_v63, %v2270_v48  ;;  %v2335_v41 = vpop.f32.mrf.mxu1 }
 0x24f   : > { %v1773_v19 = vadd.f32 %v1729_v25, %v1371_v8  ;;  %v2336_v21 = vadd.f32 %v2335_v41, %v2334_v33 }
 0x251   : > { %1790 = vst.msk [vmem:[%s2870_s12 + $0x30] sm:$0xff] %vm1783_vm14, %v1773_v19  ;;  %v1732_v22 = vadd.f32 %v2336_v21, %v2272_v50  ;;  %v1379_v21 = vld [vmem:[%s2870_s12 + $0x70] sm:$0xff] }
 0x253   : > { %v1774_v54 = vadd.f32 %v1732_v22, %v1372_v5 }
 0x255   : > { %1791 = vst.msk [vmem:[%s2870_s12 + $0x38] sm:$0xff] %vm1783_vm14, %v1774_v54 }
 0x25a   : > { %v2273_v43 = vpop.f32.mrf.mxu0  ;;  %v2337_v10 = vpop.f32.mrf.mxu1 }
 0x25c   : > { %v2274_v58 = vpop.f32.mrf.mxu0  ;;  %v2338_v62 = vpop.f32.mrf.mxu1 }
 0x25d   : > { %v2275_v32 = vadd.f32 %v2274_v58, %v2273_v43  ;;  %v2339_v26 = vadd.f32 %v2338_v62, %v2337_v10 }
 0x25e   : > { %v2276_v23 = vpop.f32.mrf.mxu0  ;;  %v2340_v52 = vpop.f32.mrf.mxu1 }
 0x25f   : > { %v1737_v24 = vadd.f32 %v2339_v26, %v2275_v32  ;;  %v1380_v26 = vld [vmem:[%s2870_s12 + $0x78] sm:$0xff] }
 0x260   : > { %v2277_v38 = vpop.f32.mrf.mxu0  ;;  %v2341_v60 = vpop.f32.mrf.mxu1 }
 0x261   : > { %v2278_v42 = vadd.f32 %v2277_v38, %v2276_v23  ;;  %v1775_v55 = vadd.f32 %v1737_v24, %v1373_v51  ;;  %v2342_v14 = vadd.f32 %v2341_v60, %v2340_v52 }
 0x263   : > { %1792 = vst.msk [vmem:[%s2870_s12 + $0x40] sm:$0xff] %vm1783_vm14, %v1775_v55  ;;  %v1740_v45 = vadd.f32 %v2342_v14, %v2278_v42 }
 0x265   : > { %v1776_v57 = vadd.f32 %v1740_v45, %v1374_v47 }
 0x267   : > { %1793 = vst.msk [vmem:[%s2870_s12 + $0x48] sm:$0xff] %vm1783_vm14, %v1776_v57 }
 0x26d   : > { %v2279_v13 = vpop.f32.mrf.mxu0  ;;  %v2343_v40 = vpop.f32.mrf.mxu1 }
 0x26f   : > { %v2280_v1 = vpop.f32.mrf.mxu0  ;;  %v2344_v3 = vpop.f32.mrf.mxu1 }
 0x270   : > { %v2281_v35 = vadd.f32 %v2280_v1, %v2279_v13  ;;  %v2345_v7 = vadd.f32 %v2344_v3, %v2343_v40 }
 0x271   : > { %v2282_v16 = vpop.f32.mrf.mxu0  ;;  %v2346_v34 = vpop.f32.mrf.mxu1 }
 0x272   : > { %v1745_v44 = vadd.f32 %v2345_v7, %v2281_v35 }
 0x273   : > { %v2283_v9 = vpop.f32.mrf.mxu0  ;;  %v2347_v11 = vpop.f32.mrf.mxu1 }
 0x274   : > { %v2284_v53 = vadd.f32 %v2283_v9, %v2282_v16  ;;  %v1777_v30 = vadd.f32 %v1745_v44, %v1375_v6  ;;  %v2348_v0 = vadd.f32 %v2347_v11, %v2346_v34 }
 0x276   : > { %1794 = vst.msk [vmem:[%s2870_s12 + $0x50] sm:$0xff] %vm1783_vm14, %v1777_v30  ;;  %v1748_v49 = vadd.f32 %v2348_v0, %v2284_v53 }
 0x278   : > { %v1778_v37 = vadd.f32 %v1748_v49, %v1376_v31 }
 0x27a   : > { %1795 = vst.msk [vmem:[%s2870_s12 + $0x58] sm:$0xff] %vm1783_vm14, %v1778_v37 }
 0x280   : > { %v2285_v15 = vpop.f32.mrf.mxu0  ;;  %v2349_v28 = vpop.f32.mrf.mxu1 }
 0x282   : > { %v2286_v18 = vpop.f32.mrf.mxu0  ;;  %v2350_v17 = vpop.f32.mrf.mxu1 }
 0x283   : > { %v2287_v46 = vadd.f32 %v2286_v18, %v2285_v15  ;;  %v2351_v27 = vadd.f32 %v2350_v17, %v2349_v28 }
 0x284   : > { %v2288_v4 = vpop.f32.mrf.mxu0  ;;  %v2352_v61 = vpop.f32.mrf.mxu1 }
 0x285   : > { %v1753_v29 = vadd.f32 %v2351_v27, %v2287_v46 }
 0x286   : > { %v2289_v12 = vpop.f32.mrf.mxu0  ;;  %v2353_v56 = vpop.f32.mrf.mxu1 }
 0x287   : > { %v2290_v39 = vadd.f32 %v2289_v12, %v2288_v4  ;;  %v1779_v2 = vadd.f32 %v1753_v29, %v1377_v20  ;;  %v2354_v36 = vadd.f32 %v2353_v56, %v2352_v61 }
 0x289   : > { %1796 = vst.msk [vmem:[%s2870_s12 + $0x60] sm:$0xff] %vm1783_vm14, %v1779_v2  ;;  %v1756_v48 = vadd.f32 %v2354_v36, %v2290_v39 }
 0x28b   : > { %v1780_v8 = vadd.f32 %v1756_v48, %v1378_v59 }
 0x28d   : > { %1797 = vst.msk [vmem:[%s2870_s12 + $0x68] sm:$0xff] %vm1783_vm14, %v1780_v8 }
 0x294   : > { %v2291_v33 = vpop.f32.mrf.mxu0  ;;  %v2355_v25 = vpop.f32.mrf.mxu1 }
 0x296   : > { %v2292_v63 = vpop.f32.mrf.mxu0  ;;  %v2356_v50 = vpop.f32.mrf.mxu1 }
 0x297   : > { %v2293_v41 = vadd.f32 %v2292_v63, %v2291_v33  ;;  %v2357_v19 = vadd.f32 %v2356_v50, %v2355_v25 }
 0x298   : > { %v2294_v5 = vpop.f32.mrf.mxu0  ;;  %v2358_v22 = vpop.f32.mrf.mxu1 }
 0x299   : > { %v1761_v54 = vadd.f32 %v2357_v19, %v2293_v41 }
 0x29a   : > { %v2295_v43 = vpop.f32.mrf.mxu0  ;;  %v2359_v10 = vpop.f32.mrf.mxu1 }
 0x29b   : > { %v1781_v58 = vadd.f32 %v1761_v54, %v1379_v21  ;;  %v2296_v32 = vadd.f32 %v2295_v43, %v2294_v5  ;;  %v2360_v62 = vadd.f32 %v2359_v10, %v2358_v22 }
 0x29d   : > { %1798 = vst.msk [vmem:[%s2870_s12 + $0x70] sm:$0xff] %vm1783_vm14, %v1781_v58  ;;  %v1764_v23 = vadd.f32 %v2360_v62, %v2296_v32  ;;  %1948 = sbr.rel (%p2225_p1) target bundleno = 703 (0x2bf), region = 48 }
 0x29f   : > { %v1782_v51 = vadd.f32 %v1764_v23, %v1380_v26 }
 0x2a1   : > { %1799 = vst.msk [vmem:[%s2870_s12 + $0x78] sm:$0xff] %vm1783_vm14, %v1782_v51 }
 0x2a2   : > { %v1949_v52 = vld [vmem:[%s2889_s13 + $0x2] sm:$0x1]  ;;  %v1953_v42 = vld [vmem:[%s2870_s12 + $0x8] sm:$0xff]  ;;  %v1954_v60 = vld [vmem:[%s2870_s12 + $0x10] sm:$0xff] }
 0x2a3   : > { %v1950_v24 = vmax.f32 %v1949_v52, 1.0  ;;  %v1952_v38 = vld [vmem:[%s2870_s12] sm:$0xff]  ;;  %v1955_v55 = vld [vmem:[%s2870_s12 + $0x18] sm:$0xff]  ;;  %v1957_v45 = vld [vmem:[%s2870_s12 + $0x28] sm:$0xff] }
 0x2a4   : > { %v1956_v47 = vld [vmem:[%s2870_s12 + $0x20] sm:$0xff]  ;;  %v1958_v57 = vld [vmem:[%s2870_s12 + $0x30] sm:$0xff]  ;;  %v1959_v1 = vld [vmem:[%s2870_s12 + $0x38] sm:$0xff] }
 0x2a5   : > { %2639 = vrcp.f32 %v1950_v24  ;;  %v4389_v13 = vld [vmem:[#allocation18_spill] sm:$0xff]  ;;  %v1961_v3 = vld [vmem:[%s2870_s12 + $0x48] sm:$0xff]  ;;  %v1962_v7 = vld [vmem:[%s2870_s12 + $0x50] sm:$0xff] }
 0x2a6   : > { %v1960_v35 = vld [vmem:[%s2870_s12 + $0x40] sm:$0xff]  ;;  %v1963_v16 = vld [vmem:[%s2870_s12 + $0x58] sm:$0xff]  ;;  %v1965_v11 = vld [vmem:[%s2870_s12 + $0x68] sm:$0xff] }
 0x2a7   : > { %v1964_v6 = vld [vmem:[%s2870_s12 + $0x60] sm:$0xff]  ;;  %v1966_v30 = vld [vmem:[%s2870_s12 + $0x70] sm:$0xff] }
 0x2a8   : > { %v1967_v0 = vld [vmem:[%s2870_s12 + $0x78] sm:$0xff] }
 0x2b2   : > { %v2640_v14 = vpop.eup %2639 }
 0x2b3   : > { %v1971_v40 = vrot.slane %v2640_v14, %v4389_v13 }
 0x2b5   : > { %v1972_v34 = vmul.f32 %v1971_v40, %v1952_v38  ;;  %v1973_v44 = vmul.f32 %v1971_v40, %v1953_v42  ;;  %v1974_v9 = vmul.f32 %v1971_v40, %v1954_v60  ;;  %v1975_v53 = vmul.f32 %v1971_v40, %v1955_v55 }
 0x2b6   : > { %v1976_v31 = vmul.f32 %v1971_v40, %v1956_v47  ;;  %v1977_v49 = vmul.f32 %v1971_v40, %v1957_v45  ;;  %v1978_v37 = vmul.f32 %v1971_v40, %v1958_v57  ;;  %v1979_v15 = vmul.f32 %v1971_v40, %v1959_v1 }
 0x2b7   : > { %1988 = vst.msk [vmem:[%s2870_s12] sm:$0xff] %vm1783_vm14, %v1972_v34  ;;  %1989 = vst.msk [vmem:[%s2870_s12 + $0x8] sm:$0xff] %vm1783_vm14, %v1973_v44  ;;  %v1980_v28 = vmul.f32 %v1971_v40, %v1960_v35  ;;  %v1981_v18 = vmul.f32 %v1971_v40, %v1961_v3  ;;  %v1982_v46 = vmul.f32 %v1971_v40, %v1962_v7 }
 0x2b8   : > { %1990 = vst.msk [vmem:[%s2870_s12 + $0x10] sm:$0xff] %vm1783_vm14, %v1974_v9  ;;  %1991 = vst.msk [vmem:[%s2870_s12 + $0x18] sm:$0xff] %vm1783_vm14, %v1975_v53  ;;  %v1983_v17 = vmul.f32 %v1971_v40, %v1963_v16  ;;  %v1984_v27 = vmul.f32 %v1971_v40, %v1964_v6  ;;  %v1985_v4 = vmul.f32 %v1971_v40, %v1965_v11 }
 0x2b9   : > { %1992 = vst.msk [vmem:[%s2870_s12 + $0x20] sm:$0xff] %vm1783_vm14, %v1976_v31  ;;  %1993 = vst.msk [vmem:[%s2870_s12 + $0x28] sm:$0xff] %vm1783_vm14, %v1977_v49  ;;  %v1986_v20 = vmul.f32 %v1971_v40, %v1966_v30  ;;  %v1987_v61 = vmul.f32 %v1971_v40, %v1967_v0 }
 0x2ba   : > { %1994 = vst.msk [vmem:[%s2870_s12 + $0x30] sm:$0xff] %vm1783_vm14, %v1978_v37  ;;  %1995 = vst.msk [vmem:[%s2870_s12 + $0x38] sm:$0xff] %vm1783_vm14, %v1979_v15 }
 0x2bb   : > { %1996 = vst.msk [vmem:[%s2870_s12 + $0x40] sm:$0xff] %vm1783_vm14, %v1980_v28  ;;  %1997 = vst.msk [vmem:[%s2870_s12 + $0x48] sm:$0xff] %vm1783_vm14, %v1981_v18 }
 0x2bc   : > { %1998 = vst.msk [vmem:[%s2870_s12 + $0x50] sm:$0xff] %vm1783_vm14, %v1982_v46  ;;  %1999 = vst.msk [vmem:[%s2870_s12 + $0x58] sm:$0xff] %vm1783_vm14, %v1983_v17 }
 0x2bd   : > { %2000 = vst.msk [vmem:[%s2870_s12 + $0x60] sm:$0xff] %vm1783_vm14, %v1984_v27  ;;  %2001 = vst.msk [vmem:[%s2870_s12 + $0x68] sm:$0xff] %vm1783_vm14, %v1985_v4 }
 0x2be   : > { %2002 = vst.msk [vmem:[%s2870_s12 + $0x70] sm:$0xff] %vm1783_vm14, %v1986_v20  ;;  %2003 = vst.msk [vmem:[%s2870_s12 + $0x78] sm:$0xff] %vm1783_vm14, %v1987_v61 }
 0x2bf PF: > { %s2228_s27 = sshll.u32 %s2721_s28, 7  ;;  %s2029_s11 = sshll.u32 %s2891_s6, 4  ;;  %s4105_s11 = int_to_ptr.vmem [resolvable:$true] %s2029_s11 }
 0x2c0   : > { %s2026_s13 = sadd.s32 %s2228_s27, %s2857_s21  ;;  %s4390_s12 = sand.u32 1, %s2709_s25  }
 0x2c1   : > { %s2229_s19 = sshll.u32 %s2026_s13, 7  ;;  %s4114_s16 = scalar_lea.sflag [#allocation3], %s4390_s12 }
 0x2c2   : > { %s4110_s23 = scalar_lea.hbm %s4170_s5, %s2229_s19  ;;  %s2641_s9 = scalar_lea.vmem %s4105_s11, 8192 }
 0x2c3   : > { %p2642_p2 = scmp.ne.s32.totalorder %s4105_s11, %s2641_s9  ;;  %s2740_s6 = smov [#allocation2]  }
 0x2c4   : > { %s2645_s28 = sshll.u32 %s2740_s6, 4  ;;  %s2646_s28 = int_to_ptr.vmem [resolvable:$false] %s2645_s28 }
 0x2c5   : > { %p2643_p4 = pnand %p2642_p2, %p2835_p3  ;;  %s2647_s21 = scalar_lea.vmem %s2646_s28, 16384 }
 0x2c6   : > { %p2648_p6 = scmp.lt.s32.totalorder %s4105_s11, %s2646_s28  ;;  %p2649_p7 = scmp.lt.s32.totalorder %s2647_s21, %s2641_s9 }
 0x2c7   : > { %p2644_p5 = pneg %p2643_p4 }
 0x2c8   : > { %p2650_p9 = por %p2649_p7, %p2648_p6 }
 0x2ca   : > { %p2651_p10 = pnand %p2650_p9, %p2644_p5 }
 0x2cc   : > { %2654 = shalt.err (!%p2651_p10)
}
 0x2cd   : > { %s2655_s10 = scalar_lea.hbm %s4110_s23, 8192  ;;  %s2659_s26 = scalar_lea.hbm %s4170_s5, 32768 }
 0x2ce   : > { %p2656_p11 = scmp.ne.s32.totalorder %s4110_s23, %s2655_s10  ;;  %p2660_p0 = scmp.lt.s32.totalorder %s4110_s23, %s4170_s5 }
 0x2cf   : > { %p2661_p1 = scmp.lt.s32.totalorder %s2659_s26, %s2655_s10 }
 0x2d0   : > { %p2657_p12 = pnand %p2656_p11, %p2835_p3 }
 0x2d1   : > { %p2662_p2 = por %p2661_p1, %p2660_p0 }
 0x2d2   : > { %p2658_p13 = pneg %p2657_p12 }
 0x2d4   : > { %p2663_p4 = pnand %p2662_p2, %p2658_p13 }
 0x2d6   : > { %2666 = shalt.err (!%p2663_p4)
}
 0x2d7   : > { %s2741_s30 = smov 512   ;;  %s2742_s15 = smov 1024  }
 0x2d8   : > { %s2743_s8 = smov 32  }
 0x2d9   : > { %2361 = dma.vmem_to_hbm [thread:$0]  (%p2835_p3), %s4105_s11, 8192, %s4110_s23, %s4114_s16, %s2741_s30, %s2742_s15, %s2743_s8  }
 0x2da PF: > { %s4391_s27 = sld [smem:[#allocation9_spill]] }
 0x2db   : > { %s4392_s13 = sld [smem:[#allocation5_spill]] }
 0x2e0   : > { %p2367_p5 = scmp.ge.s32.totalorder %s4391_s27, 2 }
 0x2e1   : > { %s2050_s20 = sand.u32 1, %s4392_s13  }
 0x2e2   : > { %p2364_p6 = pnand %p2367_p5, %p2844_p8  ;;  %s2051_s22 = scalar_lea.sflag [#allocation3], %s2050_s20 }
 0x2e4   : > { %p2365_p7 = pneg %p2364_p6 }
 0x2e6   : > { %2700 = dma.done.wait (%p2365_p7), %s2051_s22, 8192  }
 0x2e7   : > { %2702 = vsyncadd (%p2365_p7), %s2051_s22, 4294959104  ;;  %s21_s8 = sadd.s32 1, %s4391_s27   ;;  %s4394_s12 = sld [smem:[#allocation6_spill]] }
 0x2e8   : > { %p18_p9 = scmp.ge.s32.totalorder %s21_s8, 6   ;;  %s4395_s26 = sld [smem:[#allocation13_spill]] }
 0x2e9   : > { %s4396_s27 = sld [smem:[#allocation7_spill]]  ;;  %s4400_s24 = smov %s2709_s25 }
 0x2ea   : > { %s4397_s28 = sld [smem:[#allocation8_spill]]  ;;  %20 = sbr.rel (!%p18_p9) target bundleno = 7 (0x7), region = 115 }
 0x2eb   : > { %s4398_s29 = sld [smem:[#allocation10_spill]] }
 0x2ec   : > { %s4399_s30 = sld [smem:[#allocation11_spill]] }
 0x2ed   : > { %s4401_s25 = smov %s4394_s12 }
 0x2ef   :  { %2071 = vsyncpa [#allocation3], 1 }
 0x2f0   :  { %2073 = vsyncpa [#allocation3 + $0x1], 1 }

</bundles_post_ra>
